<compile_context>
chip_gen: v6e
topology: v6e:2x2x1
jax: 0.10.0
libtpu: 0.0.40
codegen_flags: <defaults>
</compile_context>

<pallas_src>
import jax
import jax.numpy as jnp
from jax.experimental import pallas as pl
from jax.experimental.pallas import tpu as pltpu

N_SIZE = 5
REFLECT_SIZE = 90
HIDDEN = 256
LEAK = 0.2


def _leaky_relu(x, slope=LEAK):
    return jnp.where(x > 0, x, slope * x)


def discriminator_kernel(inp_ref, lab_ref, w1a_ref, w1b_ref, b1_ref,
                         w2_ref, b2_ref, w3_ref, b3_ref, o_ref):
    """One batch tile (TM rows) of the whole MLP: 2 MXU matmuls + VPU/XLU tail."""
    # ---- Layer 1: fused concat -> split matmul -------------------------------
    # input part on the MXU (bf16 operands, f32 accumulate)
    h = jnp.dot(inp_ref[...].astype(jnp.bfloat16), w1a_ref[...],
                preferred_element_type=jnp.float32)          # (TM, 256) f32
    # label part (K=5) on the VPU: 5 broadcast multiply-adds, overlaps with MXU
    lab = lab_ref[...]                                       # (TM, 5)  f32
    w1b = w1b_ref[...]                                       # (5, 256) f32
    for k in range(lab_ref.shape[-1]):                       # static unroll
        h = h + lab[:, k:k + 1] * w1b[k:k + 1, :]
    h = _leaky_relu(h + b1_ref[...])

    # ---- Layer 2: 256 -> 256 on the MXU --------------------------------------
    h = jnp.dot(h.astype(jnp.bfloat16), w2_ref[...],
                preferred_element_type=jnp.float32) + b2_ref[...]
    h = _leaky_relu(h)

    # ---- Layer 3: 256 -> 1 as VPU mul + XLU reduce, sigmoid epilogue ----------
    z = jnp.sum(h * w3_ref[...], axis=-1, keepdims=True) + b3_ref[0]   # (TM, 1)
    o_ref[...] = jax.nn.sigmoid(z).astype(o_ref.dtype)


def discriminator_forward(inp, label, params, *, tm=128):
    """inp: (B, reflect_size), label: (B, n_size) -> (B, 1) probabilities."""
    B, reflect = inp.shape
    n = label.shape[1]

    # Pad the batch to a multiple of the tile (no-op when B % tm == 0).
    B_pad = pl.cdiv(B, tm) * tm
    if B_pad != B:
        inp = jnp.pad(inp, ((0, B_pad - B), (0, 0)))
        label = jnp.pad(label, ((0, B_pad - B), (0, 0)))

    # Split / cast weights once in the wrapper (tiny, weight-only work).
    w1, b1 = params["w1"], params["b1"]
    w2, b2 = params["w2"], params["b2"]
    w3, b3 = params["w3"], params["b3"]
    w1a = w1[:reflect].astype(jnp.bfloat16)          # (90, 256) bf16  -> MXU
    w1b = w1[reflect:].astype(jnp.float32)           # (5, 256)  f32   -> VPU
    w2c = w2.astype(jnp.bfloat16)                    # (256,256) bf16  -> MXU
    w3r = w3.reshape(1, HIDDEN).astype(jnp.float32)  # (1, 256)  f32   -> VPU/XLU
    b3s = b3.reshape((1,)).astype(jnp.float32)       # scalar in SMEM

    grid = (B_pad // tm,)

    cost = pl.CostEstimate(
        flops=2 * B_pad * (reflect * HIDDEN + n * HIDDEN + HIDDEN * HIDDEN + HIDDEN),
        transcendentals=B_pad,
        bytes_accessed=(inp.size * 4 + label.size * 4
                        + w1a.size * 2 + w1b.size * 4 + b1.size * 4
                        + w2c.size * 2 + b2.size * 4 + w3r.size * 4 + 4
                        + B_pad * 4),
    )

    out = pl.pallas_call(
        discriminator_kernel,
        out_shape=jax.ShapeDtypeStruct((B_pad, 1), jnp.float32),
        grid=grid,
        in_specs=[
            pl.BlockSpec((tm, reflect), lambda i: (i, 0)),        # input tile
            pl.BlockSpec((tm, n), lambda i: (i, 0)),              # label tile
            pl.BlockSpec((reflect, HIDDEN), lambda i: (0, 0)),    # w1a (resident)
            pl.BlockSpec((n, HIDDEN), lambda i: (0, 0)),          # w1b (resident)
            pl.BlockSpec((1, HIDDEN), lambda i: (0, 0)),          # b1
            pl.BlockSpec((HIDDEN, HIDDEN), lambda i: (0, 0)),     # w2 (resident)
            pl.BlockSpec((1, HIDDEN), lambda i: (0, 0)),          # b2
            pl.BlockSpec((1, HIDDEN), lambda i: (0, 0)),          # w3 row
            pl.BlockSpec(memory_space=pltpu.MemorySpace.SMEM),    # b3 scalar
        ],
        out_specs=pl.BlockSpec((tm, 1), lambda i: (i, 0)),
        compiler_params=pltpu.CompilerParams(
            dimension_semantics=("parallel",)),
        cost_estimate=cost,
    )(inp, label, w1a, w1b, b1, w2c, b2, w3r, b3s)

    return out[:B]


def init_params(key, n_size=N_SIZE, reflect_size=REFLECT_SIZE):
    """Mimics utils.initialize_weights: Linear weights ~ N(0, 0.02), biases = 0.
    Weights stored as (in_features, out_features) so y = x @ W + b."""
    d_in = n_size + reflect_size
    k1, k2, k3 = jax.random.split(key, 3)
    std = 0.02
    return {
        "w1": std * jax.random.normal(k1, (d_in, HIDDEN), jnp.float32),
        "b1": jnp.zeros((1, HIDDEN), jnp.float32),
        "w2": std * jax.random.normal(k2, (HIDDEN, HIDDEN), jnp.float32),
        "b2": jnp.zeros((1, HIDDEN), jnp.float32),
        "w3": std * jax.random.normal(k3, (HIDDEN, 1), jnp.float32),
        "b3": jnp.zeros((1, 1), jnp.float32),
    }


def _reference(inp, label, params):
    """Pure-JAX reference using the same mixed-precision recipe as the kernel."""
    reflect = inp.shape[1]
    w1, b1 = params["w1"], params["b1"]
    w2, b2 = params["w2"], params["b2"]
    w3, b3 = params["w3"], params["b3"]
    h = jnp.dot(inp.astype(jnp.bfloat16), w1[:reflect].astype(jnp.bfloat16),
                preferred_element_type=jnp.float32)
    h = h + jnp.dot(label, w1[reflect:]) + b1
    h = _leaky_relu(h)
    h = jnp.dot(h.astype(jnp.bfloat16), w2.astype(jnp.bfloat16),
                preferred_element_type=jnp.float32) + b2
    h = _leaky_relu(h)
    z = jnp.sum(h * w3.reshape(1, HIDDEN), axis=-1, keepdims=True) + b3[0, 0]
    return jax.nn.sigmoid(z)


if __name__ == "__main__":
    n_size, reflect_size, batch = N_SIZE, REFLECT_SIZE, 8

    key = jax.random.PRNGKey(0)
    k_in, k_lab, k_par = jax.random.split(key, 3)

    inp = jax.random.normal(k_in, (batch, reflect_size), jnp.float32)
    label = jax.random.normal(k_lab, (batch, n_size), jnp.float32)
    params = init_params(k_par, n_size=n_size, reflect_size=reflect_size)

    out = jax.block_until_ready(discriminator_forward(inp, label, params))

    assert out.shape == (batch, 1)
    assert bool(jnp.all((out > 0.0) & (out < 1.0)))          # sigmoid range
    ref = _reference(inp, label, params)
    assert bool(jnp.allclose(out, ref, atol=2e-3)), (out, ref)

    print("KERNEL_OK")
</pallas_src>

<mosaic_0001>
module attributes {stable_mosaic.version = 11 : i64} {
  func.func @discriminator_kernel(%arg0: i32, %arg1: memref<128x90xf32, #tpu.memory_space<vmem>>, %arg2: memref<128x5xf32, #tpu.memory_space<vmem>>, %arg3: memref<90x256xbf16, #tpu.memory_space<vmem>>, %arg4: memref<5x256xf32, #tpu.memory_space<vmem>>, %arg5: memref<1x256xf32, #tpu.memory_space<vmem>>, %arg6: memref<256x256xbf16, #tpu.memory_space<vmem>>, %arg7: memref<1x256xf32, #tpu.memory_space<vmem>>, %arg8: memref<1x256xf32, #tpu.memory_space<vmem>>, %arg9: memref<1xf32, #tpu.memory_space<smem>>, %arg10: memref<128x1xf32, #tpu.memory_space<vmem>>) attributes {dimension_semantics = [#tpu.dimension_semantics<parallel>], iteration_bounds = array<i64: 1>, scalar_prefetch = 0 : i64, scratch_operands = 0 : i64, tpu.core_type = #tpu.core_type<tc>, window_params = [{transform_indices = @transform_0, window_bounds = array<i64: 128, 90>}, {transform_indices = @transform_1, window_bounds = array<i64: 128, 5>}, {pipeline_mode = #tpu.pipeline_mode<synchronous>, transform_indices = @transform_2, window_bounds = array<i64: 90, 256>}, {pipeline_mode = #tpu.pipeline_mode<synchronous>, transform_indices = @transform_3, window_bounds = array<i64: 5, 256>}, {pipeline_mode = #tpu.pipeline_mode<synchronous>, transform_indices = @transform_4, window_bounds = array<i64: 1, 256>}, {pipeline_mode = #tpu.pipeline_mode<synchronous>, transform_indices = @transform_5, window_bounds = array<i64: 256, 256>}, {pipeline_mode = #tpu.pipeline_mode<synchronous>, transform_indices = @transform_6, window_bounds = array<i64: 1, 256>}, {pipeline_mode = #tpu.pipeline_mode<synchronous>, transform_indices = @transform_7, window_bounds = array<i64: 1, 256>}, {transform_indices = @transform_8, window_bounds = array<i64: 1>}, {transform_indices = @transform_9, window_bounds = array<i64: 128, 1>}]} {
    %c0 = arith.constant 0 : index
    %c0_0 = arith.constant 0 : index
    %0 = vector.load %arg1[%c0, %c0_0] : memref<128x90xf32, #tpu.memory_space<vmem>>, vector<128x90xf32>
    %1 = arith.truncf %0 : vector<128x90xf32> to vector<128x90xbf16>
    %c0_1 = arith.constant 0 : index
    %c0_2 = arith.constant 0 : index
    %2 = vector.load %arg3[%c0_1, %c0_2] : memref<90x256xbf16, #tpu.memory_space<vmem>>, vector<90x256xbf16>
    %cst = arith.constant dense<0.000000e+00> : vector<128x256xf32>
    %3 = tpu.matmul %1, %2, %cst {dimension_numbers = #tpu.dot_dimension_numbers<[1], [0], [0], [1], [0, 0, 1, 1], [], []>} : vector<128x90xbf16>, vector<90x256xbf16>, vector<128x256xf32> -> vector<128x256xf32>
    %c0_3 = arith.constant 0 : index
    %c0_4 = arith.constant 0 : index
    %4 = vector.load %arg2[%c0_3, %c0_4] : memref<128x5xf32, #tpu.memory_space<vmem>>, vector<128x5xf32>
    %c0_5 = arith.constant 0 : index
    %c0_6 = arith.constant 0 : index
    %5 = vector.load %arg4[%c0_5, %c0_6] : memref<5x256xf32, #tpu.memory_space<vmem>>, vector<5x256xf32>
    %6 = vector.extract_strided_slice %4 {offsets = [0, 0], sizes = [128, 1], strides = [1, 1]} : vector<128x5xf32> to vector<128x1xf32>
    %7 = vector.extract_strided_slice %5 {offsets = [0, 0], sizes = [1, 256], strides = [1, 1]} : vector<5x256xf32> to vector<1x256xf32>
    %8 = vector.broadcast %6 : vector<128x1xf32> to vector<128x256xf32>
    %9 = vector.broadcast %7 : vector<1x256xf32> to vector<128x256xf32>
    %10 = arith.mulf %8, %9 : vector<128x256xf32>
    %11 = arith.addf %3, %10 : vector<128x256xf32>
    %12 = vector.extract_strided_slice %4 {offsets = [0, 1], sizes = [128, 1], strides = [1, 1]} : vector<128x5xf32> to vector<128x1xf32>
    %13 = vector.extract_strided_slice %5 {offsets = [1, 0], sizes = [1, 256], strides = [1, 1]} : vector<5x256xf32> to vector<1x256xf32>
    %14 = vector.broadcast %12 : vector<128x1xf32> to vector<128x256xf32>
    %15 = vector.broadcast %13 : vector<1x256xf32> to vector<128x256xf32>
    %16 = arith.mulf %14, %15 : vector<128x256xf32>
    %17 = arith.addf %11, %16 : vector<128x256xf32>
    %18 = vector.extract_strided_slice %4 {offsets = [0, 2], sizes = [128, 1], strides = [1, 1]} : vector<128x5xf32> to vector<128x1xf32>
    %19 = vector.extract_strided_slice %5 {offsets = [2, 0], sizes = [1, 256], strides = [1, 1]} : vector<5x256xf32> to vector<1x256xf32>
    %20 = vector.broadcast %18 : vector<128x1xf32> to vector<128x256xf32>
    %21 = vector.broadcast %19 : vector<1x256xf32> to vector<128x256xf32>
    %22 = arith.mulf %20, %21 : vector<128x256xf32>
    %23 = arith.addf %17, %22 : vector<128x256xf32>
    %24 = vector.extract_strided_slice %4 {offsets = [0, 3], sizes = [128, 1], strides = [1, 1]} : vector<128x5xf32> to vector<128x1xf32>
    %25 = vector.extract_strided_slice %5 {offsets = [3, 0], sizes = [1, 256], strides = [1, 1]} : vector<5x256xf32> to vector<1x256xf32>
    %26 = vector.broadcast %24 : vector<128x1xf32> to vector<128x256xf32>
    %27 = vector.broadcast %25 : vector<1x256xf32> to vector<128x256xf32>
    %28 = arith.mulf %26, %27 : vector<128x256xf32>
    %29 = arith.addf %23, %28 : vector<128x256xf32>
    %30 = vector.extract_strided_slice %4 {offsets = [0, 4], sizes = [128, 1], strides = [1, 1]} : vector<128x5xf32> to vector<128x1xf32>
    %31 = vector.extract_strided_slice %5 {offsets = [4, 0], sizes = [1, 256], strides = [1, 1]} : vector<5x256xf32> to vector<1x256xf32>
    %32 = vector.broadcast %30 : vector<128x1xf32> to vector<128x256xf32>
    %33 = vector.broadcast %31 : vector<1x256xf32> to vector<128x256xf32>
    %34 = arith.mulf %32, %33 : vector<128x256xf32>
    %35 = arith.addf %29, %34 : vector<128x256xf32>
    %c0_7 = arith.constant 0 : index
    %c0_8 = arith.constant 0 : index
    %36 = vector.load %arg5[%c0_7, %c0_8] : memref<1x256xf32, #tpu.memory_space<vmem>>, vector<1x256xf32>
    %37 = vector.broadcast %36 : vector<1x256xf32> to vector<128x256xf32>
    %38 = arith.addf %35, %37 : vector<128x256xf32>
    %cst_9 = arith.constant 0.000000e+00 : f32
    %39 = vector.broadcast %cst_9 : f32 to vector<128x256xf32>
    %40 = arith.cmpf ogt, %38, %39 : vector<128x256xf32>
    %cst_10 = arith.constant 2.000000e-01 : f32
    %41 = vector.broadcast %cst_10 : f32 to vector<128x256xf32>
    %42 = arith.mulf %41, %38 : vector<128x256xf32>
    %43 = arith.select %40, %38, %42 : vector<128x256xi1>, vector<128x256xf32>
    %44 = arith.truncf %43 : vector<128x256xf32> to vector<128x256xbf16>
    %c0_11 = arith.constant 0 : index
    %c0_12 = arith.constant 0 : index
    %45 = vector.load %arg6[%c0_11, %c0_12] : memref<256x256xbf16, #tpu.memory_space<vmem>>, vector<256x256xbf16>
    %cst_13 = arith.constant dense<0.000000e+00> : vector<128x256xf32>
    %46 = tpu.matmul %44, %45, %cst_13 {dimension_numbers = #tpu.dot_dimension_numbers<[1], [0], [0], [1], [0, 0, 1, 1], [], []>} : vector<128x256xbf16>, vector<256x256xbf16>, vector<128x256xf32> -> vector<128x256xf32>
    %c0_14 = arith.constant 0 : index
    %c0_15 = arith.constant 0 : index
    %47 = vector.load %arg7[%c0_14, %c0_15] : memref<1x256xf32, #tpu.memory_space<vmem>>, vector<1x256xf32>
    %48 = vector.broadcast %47 : vector<1x256xf32> to vector<128x256xf32>
    %49 = arith.addf %46, %48 : vector<128x256xf32>
    %cst_16 = arith.constant 0.000000e+00 : f32
    %50 = vector.broadcast %cst_16 : f32 to vector<128x256xf32>
    %51 = arith.cmpf ogt, %49, %50 : vector<128x256xf32>
    %cst_17 = arith.constant 2.000000e-01 : f32
    %52 = vector.broadcast %cst_17 : f32 to vector<128x256xf32>
    %53 = arith.mulf %52, %49 : vector<128x256xf32>
    %54 = arith.select %51, %49, %53 : vector<128x256xi1>, vector<128x256xf32>
    %c0_18 = arith.constant 0 : index
    %c0_19 = arith.constant 0 : index
    %55 = vector.load %arg8[%c0_18, %c0_19] : memref<1x256xf32, #tpu.memory_space<vmem>>, vector<1x256xf32>
    %56 = vector.broadcast %55 : vector<1x256xf32> to vector<128x256xf32>
    %57 = arith.mulf %54, %56 : vector<128x256xf32>
    %cst_20 = arith.constant dense<0.000000e+00> : vector<128xf32>
    %58 = vector.multi_reduction <add>, %57, %cst_20 [1] : vector<128x256xf32> to vector<128xf32>
    %59 = vector.shape_cast %58 : vector<128xf32> to vector<128x1xf32>
    %c0_21 = arith.constant 0 : index
    %60 = memref.load %arg9[%c0_21] : memref<1xf32, #tpu.memory_space<smem>>
    %61 = vector.broadcast %60 : f32 to vector<128x1xf32>
    %62 = arith.addf %59, %61 : vector<128x1xf32>
    %63 = arith.negf %62 : vector<128x1xf32>
    %64 = math.exp %63 : vector<128x1xf32>
    %cst_22 = arith.constant 1.000000e+00 : f32
    %65 = vector.broadcast %cst_22 : f32 to vector<128x1xf32>
    %66 = arith.addf %65, %64 : vector<128x1xf32>
    %67 = arith.divf %65, %66 : vector<128x1xf32>
    %c0_23 = arith.constant 0 : index
    %c0_24 = arith.constant 0 : index
    %68 = vector.load %arg10[%c0_23, %c0_24] : memref<128x1xf32, #tpu.memory_space<vmem>>, vector<128x1xf32>
    tpu.vector_store %arg10[%c0_23, %c0_24], %67 {strides = array<i32>} : memref<128x1xf32, #tpu.memory_space<vmem>>, vector<128x1xf32>,
    return
  }
  func.func @transform_0(%arg0: i32) -> (i32, i32) {
    %c0_i32 = arith.constant 0 : i32
    %c0_i32_0 = arith.constant 0 : i32
    return %arg0, %c0_i32 : i32, i32
  }
  func.func @transform_1(%arg0: i32) -> (i32, i32) {
    %c0_i32 = arith.constant 0 : i32
    %c0_i32_0 = arith.constant 0 : i32
    return %arg0, %c0_i32 : i32, i32
  }
  func.func @transform_2(%arg0: i32) -> (i32, i32) {
    %c0_i32 = arith.constant 0 : i32
    %c0_i32_0 = arith.constant 0 : i32
    %c0_i32_1 = arith.constant 0 : i32
    return %c0_i32, %c0_i32_0 : i32, i32
  }
  func.func @transform_3(%arg0: i32) -> (i32, i32) {
    %c0_i32 = arith.constant 0 : i32
    %c0_i32_0 = arith.constant 0 : i32
    %c0_i32_1 = arith.constant 0 : i32
    return %c0_i32, %c0_i32_0 : i32, i32
  }
  func.func @transform_4(%arg0: i32) -> (i32, i32) {
    %c0_i32 = arith.constant 0 : i32
    %c0_i32_0 = arith.constant 0 : i32
    %c0_i32_1 = arith.constant 0 : i32
    return %c0_i32, %c0_i32_0 : i32, i32
  }
  func.func @transform_5(%arg0: i32) -> (i32, i32) {
    %c0_i32 = arith.constant 0 : i32
    %c0_i32_0 = arith.constant 0 : i32
    %c0_i32_1 = arith.constant 0 : i32
    return %c0_i32, %c0_i32_0 : i32, i32
  }
  func.func @transform_6(%arg0: i32) -> (i32, i32) {
    %c0_i32 = arith.constant 0 : i32
    %c0_i32_0 = arith.constant 0 : i32
    %c0_i32_1 = arith.constant 0 : i32
    return %c0_i32, %c0_i32_0 : i32, i32
  }
  func.func @transform_7(%arg0: i32) -> (i32, i32) {
    %c0_i32 = arith.constant 0 : i32
    %c0_i32_0 = arith.constant 0 : i32
    %c0_i32_1 = arith.constant 0 : i32
    return %c0_i32, %c0_i32_0 : i32, i32
  }
  func.func @transform_8(%arg0: i32) -> i32 {
    %c0_i32 = arith.constant 0 : i32
    %c0_i32_0 = arith.constant 0 : i32
    return %c0_i32 : i32
  }
  func.func @transform_9(%arg0: i32) -> (i32, i32) {
    %c0_i32 = arith.constant 0 : i32
    %c0_i32_0 = arith.constant 0 : i32
    return %arg0, %c0_i32 : i32, i32
  }
}

</mosaic_0001>

<bundles_post_ra>
// kernel: tpu_custom_call.1
= control target key start
LH: loop header
LB: loop body
LE: loop exit
PB: predicated region body
PF: predicated region fallthrough
CT: control target
= control target key end

     0   :  { %15 = vsyncpa [#allocation4], 0  ;;  %s2058_s30 = smov [#allocation3]   ;;  %s3439_s0 = inlined_call_operand.vmem [shape: f32[128,90], index: 0, kind: input, shape index: {}]   ;;  %s3440_s1 = inlined_call_operand.vmem [shape: f32[128,5], index: 1, kind: input, shape index: {}]   ;;  %s3441_s2 = inlined_call_operand.vmem [shape: bf16[90,256], index: 2, kind: input, shape index: {}]   ;;  %s3442_s3 = inlined_call_operand.vmem [shape: f32[5,256], index: 3, kind: input, shape index: {}]   ;;  %s3443_s4 = inlined_call_operand.vmem [shape: f32[1,256], index: 4, kind: input, shape index: {}]   ;;  %s3444_s5 = inlined_call_operand.vmem [shape: bf16[256,256], index: 5, kind: input, shape index: {}]   ;;  %s3445_s6 = inlined_call_operand.hbm [shape: f32[1,256], index: 6, kind: input, shape index: {}]   ;;  %s3446_s7 = inlined_call_operand.vmem [shape: f32[1,256], index: 7, kind: input, shape index: {}]   ;;  %s3447_s8 = inlined_call_operand.<no memory space> [shape: f32[1], index: 8, kind: input, shape index: {}]   ;;  %s3448_s9 = inlined_call_operand.vmem [shape: f32[128,1], index: 9, kind: output, shape index: {}]  }
   0x1   :  { %s34_s10 = sshll.u32 %s2058_s30, 4  ;;  %s35_s10 = int_to_ptr.vmem [resolvable:$true] %s34_s10 }
   0x2   :  { %s2044_s11 = scalar_lea.vmem %s35_s10, 32  ;;  %p2049_p1 = scmp.lt.s32.totalorder %s35_s10, %s35_s10 }
   0x3   :  { %p2045_p0 = scmp.ne.s32.totalorder %s35_s10, %s2044_s11  ;;  %p2050_p2 = scmp.lt.s32.totalorder %s2044_s11, %s2044_s11 }
   0x5   :  { %p2051_p3 = por %p2050_p2, %p2049_p1 }
   0x7   :  { %p2052_p4 = pnand %p2051_p3, %p2045_p0 }
   0x9   :  { %2055 = shalt.err (!%p2052_p4)
}
   0xa   :  { %37 = dma.hbm_to_vmem [thread:$0]  %s3445_s6, 32, %s35_s10, [#allocation4]  }
   0xb   :  { %2056 = dma.done.wait [#allocation4], 32  }
   0xc   :  { %2057 = vsyncadd [#allocation4], 4294967264  ;;  %v2059_v0 = vmov 1   ;;  %v2060_v1 = vmov 0   ;;  %v2061_v2 = vmov 4   ;;  %v2123_v3 = vld [vmem:[%s3440_s1 + $0x20] sm:$0xff] }
   0xd   :  { %1871 = vset.pattern.permute.xlu1 %v2059_v0  ;;  %342 = vmatprep.mubr.bf16.mxu0 %v2060_v1  ;;  %vm303_vm0 = vcmask 1044480   ;;  %v1906_v4 = vld [vmem:[%s3441_s2 + $0x54] ss:$8 sps:$4 sm:$0x1f]   ;;  %v2136_v6 = vld [vmem:[%s3440_s1 + $0x28] sm:$0xff]  ;;  %v2062_v12 = vmov 2  }
   0xe   :  { %1875 = vset.pattern.permute.xlu0 %v2061_v2  ;;  %440 = vperm.xlu1 %1871, %v2123_v3   ;;  %v1908_v5 = vld [vmem:[%s3441_s2 + $0x50] ss:$8 sps:$4 sm:$0x1f]   ;;  %v1909_v8 = vld [vmem:[%s3441_s2 + $0x44] ss:$8 sps:$4 sm:$0xff]   ;;  %v2063_v17 = vmov 3  }
   0xf   :  { %848 = vperm.xlu0 %1875, %v2123_v3   ;;  %1776 = vmatprep.subr.msk.bf16.mxu0 %vm303_vm0, %v1906_v4  ;;  %v305_v7 = vsel %vm303_vm0, %v1908_v5, 0  ;;  %v1911_v9 = vld [vmem:[%s3441_s2 + $0x40] ss:$8 sps:$4 sm:$0xff]   ;;  %v1912_v10 = vld [vmem:[%s3441_s2 + $0x34] ss:$8 sps:$4 sm:$0xff]   ;;  %vm278_vm1 = vcmask 736256  }
  0x10   :  { %315 = vmatpush1.bf16.msra.mxu0 %v305_v7  ;;  %v1914_v11 = vld [vmem:[%s3441_s2 + $0x30] ss:$8 sps:$4 sm:$0xff]   ;;  %v1915_v13 = vld [vmem:[%s3441_s2 + $0x24] ss:$8 sps:$4 sm:$0xff]   ;;  %v1917_v15 = vld [vmem:[%s3441_s2 + $0x20] ss:$8 sps:$4 sm:$0xff]  }
  0x11   :  { %316 = vmatprep.subr.bf16.mxu0 %v1909_v8  ;;  %v2159_v14 = vld [vmem:[%s3440_s1 + $0x48] sm:$0xff]  ;;  %v1918_v16 = vld [vmem:[%s3441_s2 + $0x14] ss:$8 sps:$4 sm:$0xff]   ;;  %v1920_v18 = vld [vmem:[%s3441_s2 + $0x10] ss:$8 sps:$4 sm:$0xff]  }
  0x12   :  { %444 = vperm.xlu1 %1871, %v2136_v6   ;;  %v2177_v19 = vld [vmem:[%s3440_s1 + $0x30] sm:$0xff]  ;;  %v1921_v20 = vld [vmem:[%s3441_s2 + $0x4] ss:$8 sps:$4 sm:$0xff]   ;;  %v1923_v21 = vld [vmem:[%s3441_s2] ss:$8 sps:$4 sm:$0xff]  }
  0x13   :  { %868 = vperm.xlu0 %1875, %v2159_v14   ;;  %v46_v22 = vld [vmem:[%s3439_s0] sm:$0xff]  ;;  %v89_v23 = vld [vmem:[%s3440_s1 + $0x38] sm:$0xff]  ;;  %v47_v24 = vld [vmem:[%s3439_s0 + $0x8] sm:$0xff] }
  0x14   :  { %317 = vmatpush1.bf16.msra.mxu0 %v1911_v9  ;;  %v62_v25 = vpack.c.bf16 %v47_v24, %v46_v22  ;;  %v2201_v26 = vld [vmem:[%s3440_s1 + $0x50] sm:$0xff]  ;;  %v49_v28 = vld [vmem:[%s3439_s0 + $0x18] sm:$0xff]  ;;  %v2218_v29 = vld [vmem:[%s3440_s1 + $0x60] sm:$0xff] }
  0x15   :  { %318 = vmatprep.subr.bf16.mxu0 %v1912_v10  ;;  %v48_v27 = vld [vmem:[%s3439_s0 + $0x10] sm:$0xff]  ;;  %v2226_v31 = vld [vmem:[%s3440_s1 + $0x18] sm:$0xff]  ;;  %v50_v32 = vld [vmem:[%s3439_s0 + $0x20] sm:$0xff] }
  0x16   :  { %1872 = vset.pattern.permute.xlu1 %v2062_v12  ;;  %v63_v30 = vpack.c.bf16 %v49_v28, %v48_v27  ;;  %v51_v33 = vld [vmem:[%s3439_s0 + $0x28] sm:$0xff]  ;;  %v52_v35 = vld [vmem:[%s3439_s0 + $0x30] sm:$0xff]  ;;  %v53_v36 = vld [vmem:[%s3439_s0 + $0x38] sm:$0xff] }
  0x17   :  { %580 = vperm.xlu1 %1872, %v2136_v6   ;;  %1887 = vset.pattern.permute.xlu0 %v2060_v1  ;;  %v64_v34 = vpack.c.bf16 %v51_v33, %v50_v32  ;;  %v2251_v37 = vld [vmem:[%s3440_s1 + $0x40] sm:$0xff]  ;;  %v65_v38 = vpack.c.bf16 %v53_v36, %v52_v35  ;;  %v55_v40 = vld [vmem:[%s3439_s0 + $0x48] sm:$0xff]  ;;  %v56_v42 = vld [vmem:[%s3439_s0 + $0x50] sm:$0xff] }
  0x18   :  { %319 = vmatpush1.bf16.msra.mxu0 %v1914_v11  ;;  %122 = vperm.xlu0 %1887, %v2123_v3   ;;  %v54_v39 = vld [vmem:[%s3439_s0 + $0x40] sm:$0xff]  ;;  %v57_v43 = vld [vmem:[%s3439_s0 + $0x58] sm:$0xff]  ;;  %v59_v48 = vld [vmem:[%s3439_s0 + $0x68] sm:$0xff] }
  0x19   :  { %320 = vmatprep.subr.bf16.mxu0 %v1915_v13  ;;  %v66_v41 = vpack.c.bf16 %v55_v40, %v54_v39  ;;  %v67_v44 = vpack.c.bf16 %v57_v43, %v56_v42  ;;  %v1924_v45 = vld [vmem:[%s3444_s5 + $0x74] ss:$8 sps:$4 sm:$0xff]   ;;  %v1926_v46 = vld [vmem:[%s3444_s5 + $0x70] ss:$8 sps:$4 sm:$0xff]   ;;  %v58_v47 = vld [vmem:[%s3439_s0 + $0x60] sm:$0xff] }
  0x1a   :  { %v2300_v49 = vld [vmem:[%s3440_s1 + $0x8] sm:$0xff]  ;;  %1833 = vmatprep.subr.bf16.mxu1 %v1924_v45  ;;  %v68_v51 = vpack.c.bf16 %v59_v48, %v58_v47  ;;  %v2314_v53 = vld [vmem:[%s3440_s1 + $0x10] sm:$0xff]  ;;  %v61_v57 = vld [vmem:[%s3439_s0 + $0x78] sm:$0xff] }
  0x1b   :  { %1873 = vset.pattern.permute.xlu1 %v2063_v17  ;;  %1849 = vmatpush1.bf16.msra.mxu1 %v1926_v46  ;;  %v1927_v50 = vld [vmem:[%s3444_s5 + $0x64] ss:$8 sps:$4 sm:$0xff]   ;;  %v1929_v52 = vld [vmem:[%s3444_s5 + $0x60] ss:$8 sps:$4 sm:$0xff]   ;;  %v1930_v54 = vld [vmem:[%s3444_s5 + $0x54] ss:$8 sps:$4 sm:$0xff]  }
  0x1c   :  { %712 = vperm.xlu1 %1873, %v2123_v3   ;;  %321 = vmatpush1.bf16.msra.mxu0 %v1917_v15  ;;  %v1932_v55 = vld [vmem:[%s3444_s5 + $0x50] ss:$8 sps:$4 sm:$0xff]   ;;  %v1933_v59 = vld [vmem:[%s3444_s5 + $0x44] ss:$8 sps:$4 sm:$0xff]   ;;  %v1935_v61 = vld [vmem:[%s3444_s5 + $0x40] ss:$8 sps:$4 sm:$0xff]  }
  0x1d   :  { %322 = vmatprep.subr.bf16.mxu0 %v1918_v16  ;;  %127 = vperm.xlu0 %1887, %v2136_v6   ;;  %v60_v56 = vld [vmem:[%s3439_s0 + $0x70] sm:$0xff]  ;;  %v2336_v58 = vld [vmem:[%s3440_s1 + $0x78] sm:$0xff]  ;;  %v1939_v4 = vld [vmem:[%s3444_s5 + $0x24] ss:$8 sps:$4 sm:$0xff]  }
  0x1e   :  { %1834 = vmatprep.subr.bf16.mxu1 %v1927_v50  ;;  %v69_v60 = vpack.c.bf16 %v61_v57, %v60_v56  ;;  %v1936_v62 = vld [vmem:[%s3444_s5 + $0x34] ss:$8 sps:$4 sm:$0xff]   ;;  %v1941_v5 = vld [vmem:[%s3444_s5 + $0x20] ss:$8 sps:$4 sm:$0xff]   ;;  %v1944_v7 = vld [vmem:[%s3444_s5 + $0x10] ss:$8 sps:$4 sm:$0xff]  }
  0x1f   :  { %1850 = vmatpush1.bf16.msra.mxu1 %v1929_v52  ;;  %v2352_v63 = vld [vmem:[%s3440_s1 + $0x58] sm:$0xff]  ;;  %v1945_v8 = vld [vmem:[%s3444_s5 + $0x4] ss:$8 sps:$4 sm:$0xff]   ;;  %v1947_v9 = vld [vmem:[%s3444_s5] ss:$8 sps:$4 sm:$0xff]  }
  0x20   :  { %1874 = vset.pattern.permute.xlu1 %v2060_v1  ;;  %323 = vmatpush1.bf16.msra.mxu0 %v1920_v18  ;;  %v2389_v10 = vld [vmem:[%s3440_s1] sm:$0xff]  ;;  %v1948_v11 = vld [vmem:[%s3444_s5 + $0xf4] ss:$8 sps:$4 sm:$0xff]   ;;  %v1950_v13 = vld [vmem:[%s3444_s5 + $0xf0] ss:$8 sps:$4 sm:$0xff]  }
  0x21   :  { %132 = vperm.xlu1 %1874, %v2177_v19   ;;  %324 = vmatprep.subr.bf16.mxu0 %v1921_v20  ;;  %v1951_v15 = vld [vmem:[%s3444_s5 + $0xe4] ss:$8 sps:$4 sm:$0xff]   ;;  %v1953_v16 = vld [vmem:[%s3444_s5 + $0xe0] ss:$8 sps:$4 sm:$0xff]   ;;  %v1954_v18 = vld [vmem:[%s3444_s5 + $0xd4] ss:$8 sps:$4 sm:$0xff]  }
  0x22   :  { %147 = vperm.xlu0 %1887, %v2159_v14   ;;  %1835 = vmatprep.subr.bf16.mxu1 %v1930_v54  ;;  %v1957_v20 = vld [vmem:[%s3444_s5 + $0xc4] ss:$8 sps:$4 sm:$0xff]   ;;  %v1960_v22 = vld [vmem:[%s3444_s5 + $0xb4] ss:$8 sps:$4 sm:$0xff]  }
  0x23   :  { %1851 = vmatpush1.bf16.msra.mxu1 %v1932_v55  ;;  %v1963_v24 = vld [vmem:[%s3444_s5 + $0xa4] ss:$8 sps:$4 sm:$0xff]   ;;  %v1966_v27 = vld [vmem:[%s3444_s5 + $0x94] ss:$8 sps:$4 sm:$0xff]  }
  0x24   :  { %325 = vmatpush1.bf16.msra.mxu0 %v1923_v21  ;;  %1836 = vmatprep.subr.bf16.mxu1 %v1933_v59  ;;  %v1959_v21 = vld [vmem:[%s3444_s5 + $0xc0] ss:$8 sps:$4 sm:$0xff]   ;;  %v1969_v32 = vld [vmem:[%s3444_s5 + $0x84] ss:$8 sps:$4 sm:$0xff]  }
  0x25   :  { %137 = vperm.xlu1 %1874, %v89_v23   ;;  %1327 = vmatprep.subr.bf16.mxu0 %v1924_v45 }
  0x26   :  { %152 = vperm.xlu0 %1887, %v2201_v26  }
  0x27   :  { %1777 = vmatmul.mubr.msk.bf16.vlgmr.msra.gmra.mxu0 %vm278_vm1, %v62_v25  ;;  %1852 = vmatpush1.bf16.msra.mxu1 %v1935_v61  ;;  %v1965_v25 = vld [vmem:[%s3444_s5 + $0xa0] ss:$8 sps:$4 sm:$0xff]  }
  0x28   :  { %352 = vmatprep.mubr.bf16.mxu0 %v2060_v1  ;;  %1328 = vmatpush1.bf16.msra.mxu0 %v1926_v46 }
  0x29   :  { %1876 = vset.pattern.permute.xlu1 %v2061_v2  ;;  %1329 = vmatprep.subr.bf16.mxu0 %v1927_v50 }
  0x2a   :  { %852 = vperm.xlu1 %1876, %v2136_v6   ;;  %162 = vperm.xlu0 %1887, %v2218_v29  }
  0x2b   :  { %1837 = vmatprep.subr.bf16.mxu1 %v1936_v62 }
  0x2c   :  { %1330 = vmatpush1.bf16.msra.mxu0 %v1929_v52 }
  0x2d   :  { %1331 = vmatprep.subr.bf16.mxu0 %v1930_v54 }
  0x2e   :  { %1877 = vset.pattern.permute.xlu1 %v2059_v0  ;;  %117 = vperm.xlu0 %1887, %v2226_v31  }
  0x2f   :  { %448 = vperm.xlu1 %1877, %v2177_v19   ;;  %1778 = vmatmul.mubr.msk.bf16.gmra.mxu0 %vm278_vm1, %v63_v30  ;;  %v1968_v30 = vld [vmem:[%s3444_s5 + $0x90] ss:$8 sps:$4 sm:$0xff]  }
  0x30   :  { %362 = vmatprep.mubr.bf16.mxu0 %v2060_v1  ;;  %1332 = vmatpush1.bf16.msra.mxu0 %v1932_v55 }
  0x31   :  { %1333 = vmatprep.subr.bf16.mxu0 %v1933_v59 }
  0x32   :  { %1897 = vset.pattern.permute.xlu0 %v2059_v0 }
  0x33   :  { %1878 = vset.pattern.permute.xlu1 %v2062_v12  ;;  %452 = vperm.xlu0 %1897, %v89_v23  }
  0x34   :  { %584 = vperm.xlu1 %1878, %v2177_v19   ;;  %1334 = vmatpush1.bf16.msra.mxu0 %v1935_v61 }
  0x35   :  { %1335 = vmatprep.subr.bf16.mxu0 %v1936_v62 }
  0x37   :  { %1779 = vmatmul.mubr.msk.bf16.gmra.mxu0 %vm278_vm1, %v64_v34  ;;  %456 = vperm.xlu0 %1897, %v2251_v37   ;;  %v1971_v34 = vld [vmem:[%s3444_s5 + $0x80] ss:$8 sps:$4 sm:$0xff]  }
  0x38   :  { %588 = vperm.xlu1 %1878, %v89_v23   ;;  %372 = vmatprep.mubr.bf16.mxu0 %v2060_v1 }
  0x3b   :  { %472 = vperm.xlu0 %1897, %v2218_v29  }
  0x3c   :  { %1879 = vset.pattern.permute.xlu1 %v2063_v17 }
  0x3d   :  { %724 = vperm.xlu1 %1879, %v89_v23  }
  0x3f   :  { %1780 = vmatmul.mubr.msk.bf16.gmra.mxu0 %vm278_vm1, %v65_v38  ;;  %436 = vperm.xlu0 %1897, %v2226_v31  }
  0x40   :  { %382 = vmatprep.mubr.bf16.mxu0 %v2060_v1 }
  0x41   :  { %1880 = vset.pattern.permute.xlu1 %v2060_v1 }
  0x42   :  { %142 = vperm.xlu1 %1880, %v2251_v37  }
  0x43   :  { %1900 = vset.pattern.permute.xlu0 %v2062_v12 }
  0x44   :  { %576 = vperm.xlu0 %1900, %v2123_v3   ;;  %v1938_v3 = vld [vmem:[%s3444_s5 + $0x30] ss:$8 sps:$4 sm:$0xff]  }
  0x45   :  { %1853 = vmatpush1.bf16.msra.mxu1 %v1938_v3  ;;  %1336 = vmatpush1.bf16.msra.mxu0 %v1938_v3 }
  0x46   :  { %1881 = vset.pattern.permute.xlu1 %v2061_v2  ;;  %1838 = vmatprep.subr.bf16.mxu1 %v1939_v4 }
  0x47   :  { %856 = vperm.xlu1 %1881, %v2177_v19   ;;  %1781 = vmatmul.mubr.msk.bf16.gmra.mxu0 %vm278_vm1, %v66_v41 }
  0x48   :  { %392 = vmatprep.mubr.bf16.mxu0 %v2060_v1  ;;  %596 = vperm.xlu0 %1900, %v2159_v14  }
  0x49   :  { %1337 = vmatprep.subr.bf16.mxu0 %v1939_v4  ;;  %1854 = vmatpush1.bf16.msra.mxu1 %v1941_v5  ;;  %v180_v4 = vlaneseq }
  0x4a   :  { %1338 = vmatpush1.bf16.msra.mxu0 %v1941_v5 }
  0x4b   :  { %860 = vperm.xlu1 %1881, %v89_v23   ;;  %v1962_v23 = vld [vmem:[%s3444_s5 + $0xb0] ss:$8 sps:$4 sm:$0xff]  }
  0x4c   :  { %600 = vperm.xlu0 %1900, %v2201_v26  }
  0x4f   :  { %1882 = vset.pattern.permute.xlu1 %v2059_v0  ;;  %1782 = vmatmul.mubr.msk.bf16.gmra.mxu0 %vm278_vm1, %v67_v44 }
  0x50   :  { %460 = vperm.xlu1 %1882, %v2159_v14   ;;  %402 = vmatprep.mubr.bf16.mxu0 %v2060_v1 }
  0x51   :  { %564 = vperm.xlu0 %1900, %v2300_v49  }
  0x54   :  { %1883 = vset.pattern.permute.xlu1 %v2062_v12 }
  0x55   :  { %592 = vperm.xlu1 %1883, %v2251_v37   ;;  %568 = vperm.xlu0 %1900, %v2314_v53  }
  0x57   :  { %1783 = vmatmul.mubr.msk.bf16.gmra.mxu0 %vm278_vm1, %v68_v51  ;;  %v2516_v51 = vld [vmem:[%s3440_s1 + $0x70] sm:$0xff] }
  0x58   :  { %412 = vmatprep.mubr.bf16.mxu0 %v2060_v1 }
  0x59   :  { %1884 = vset.pattern.permute.xlu1 %v2063_v17  ;;  %620 = vperm.xlu0 %1900, %v2336_v58  }
  0x5a   :  { %728 = vperm.xlu1 %1884, %v2251_v37  }
  0x5d   :  { %1902 = vset.pattern.permute.xlu0 %v2063_v17 }
  0x5e   :  { %732 = vperm.xlu1 %1884, %v2159_v14   ;;  %716 = vperm.xlu0 %1902, %v2136_v6   ;;  %v1942_v6 = vld [vmem:[%s3444_s5 + $0x14] ss:$8 sps:$4 sm:$0xff]   ;;  %v2402_v14 = vld [vmem:[%s3440_s1 + $0x68] sm:$0xff] }
  0x5f   :  { %1784 = vmatmul.mubr.msk.bf16.gmra.mxu0 %vm278_vm1, %v69_v60  ;;  %1839 = vmatprep.subr.bf16.mxu1 %v1942_v6 }
  0x60   :  { %1339 = vmatprep.subr.bf16.mxu0 %v1942_v6  ;;  %1855 = vmatpush1.bf16.msra.mxu1 %v1944_v7  ;;  %v181_v6 = vshrl.u32 %v180_v4, 7 }
  0x61   :  { %1840 = vmatprep.subr.bf16.mxu1 %v1945_v8  ;;  %1340 = vmatpush1.bf16.msra.mxu0 %v1944_v7 }
  0x62   :  { %1885 = vset.pattern.permute.xlu1 %v2060_v1  ;;  %720 = vperm.xlu0 %1902, %v2177_v19   ;;  %v1956_v19 = vld [vmem:[%s3444_s5 + $0xd0] ss:$8 sps:$4 sm:$0xff]  }
  0x63   :  { %157 = vperm.xlu1 %1885, %v2352_v63   ;;  %1341 = vmatprep.subr.bf16.mxu0 %v1945_v8  ;;  %v2569_v8 = vsub.s32 1, %v181_v6 }
  0x64   :  { %1856 = vmatpush1.bf16.msra.mxu1 %v1947_v9 }
  0x65   :  { %1841 = vmatprep.subr.bf16.mxu1 %v1948_v11  ;;  %1342 = vmatpush1.bf16.msra.mxu0 %v1947_v9  ;;  %3464 = vst [vmem:[#allocation7_spill] sm:$0xff] %v2569_v8  ;;  %v98_v9 = vld [vmem:[%s3442_s3] sm:$0x1f] }
  0x66   :  { %740 = vperm.xlu0 %1902, %v2352_v63   ;;  %1343 = vmatprep.subr.bf16.mxu0 %v1948_v11 }
  0x67   :  { %1886 = vset.pattern.permute.xlu1 %v2061_v2 }
  0x68   :  { %864 = vperm.xlu1 %1886, %v2251_v37   ;;  %1857 = vmatpush2.bf16.msra.mxu1 %v1950_v13 }
  0x69   :  { %1842 = vmatprep.subr.bf16.mxu1 %v1951_v15  ;;  %1344 = vmatpush2.bf16.msra.mxu0 %v1950_v13  ;;  %v761_v13 = vsub.s32 3, %v181_v6 }
  0x6a   :  { %696 = vperm.xlu0 %1902, %v2389_v10   ;;  %1345 = vmatprep.subr.bf16.mxu0 %v1951_v15  ;;  %v2581_v15 = vsub.s32 0, %v181_v6 }
  0x6c   :  { %1888 = vset.pattern.permute.xlu1 %v2059_v0  ;;  %1858 = vmatpush2.bf16.msra.mxu1 %v1953_v16  ;;  %3467 = vst [vmem:[#allocation10_spill] sm:$0xff] %v2581_v15 }
  0x6d   :  { %464 = vperm.xlu1 %1888, %v2201_v26   ;;  %1843 = vmatprep.subr.bf16.mxu1 %v1954_v18 }
  0x6e   :  { %748 = vperm.xlu0 %1902, %v2402_v14   ;;  %1346 = vmatpush2.bf16.msra.mxu0 %v1953_v16 }
  0x6f   :  { %1347 = vmatprep.subr.bf16.mxu0 %v1954_v18  ;;  %v2587_v18 = vrot.slane %v98_v9, %v2569_v8 }
  0x70   :  { %1859 = vmatpush2.bf16.msra.mxu1 %v1956_v19 }
  0x71   :  { %468 = vperm.xlu1 %1888, %v2352_v63   ;;  %1844 = vmatprep.subr.bf16.mxu1 %v1957_v20 }
  0x72   :  { %708 = vperm.xlu0 %1902, %v2226_v31   ;;  %1348 = vmatpush2.bf16.msra.mxu0 %v1956_v19 }
  0x73   :  { %1349 = vmatprep.subr.bf16.mxu0 %v1957_v20 }
  0x74   :  { %1860 = vmatpush2.bf16.msra.mxu1 %v1959_v21 }
  0x75   :  { %1889 = vset.pattern.permute.xlu1 %v2062_v12  ;;  %1845 = vmatprep.subr.bf16.mxu1 %v1960_v22 }
  0x76   :  { %604 = vperm.xlu1 %1889, %v2352_v63   ;;  %1904 = vset.pattern.permute.xlu0 %v2061_v2 }
  0x77   :  { %876 = vperm.xlu0 %1904, %v2352_v63   ;;  %1350 = vmatpush2.bf16.msra.mxu0 %v1959_v21  ;;  %v967_v21 = vld [vmem:[%s3443_s4] sm:$0x3] }
  0x78   :  { %1351 = vmatprep.subr.bf16.mxu0 %v1960_v22  ;;  %1861 = vmatpush2.bf16.msra.mxu1 %v1962_v23 }
  0x79   :  { %1846 = vmatprep.subr.bf16.mxu1 %v1963_v24 }
  0x7a   :  { %1890 = vset.pattern.permute.xlu1 %v2063_v17 }
  0x7b   :  { %736 = vperm.xlu1 %1890, %v2201_v26   ;;  %832 = vperm.xlu0 %1904, %v2389_v10  }
  0x7c   :  { %1352 = vmatpush2.bf16.msra.mxu0 %v1962_v23  ;;  %1862 = vmatpush2.bf16.msra.mxu1 %v1965_v25 }
  0x7d   :  { %1353 = vmatprep.subr.bf16.mxu0 %v1963_v24  ;;  %1847 = vmatprep.subr.bf16.mxu1 %v1966_v27 }
  0x7f   :  { %1891 = vset.pattern.permute.xlu1 %v2060_v1  ;;  %884 = vperm.xlu0 %1904, %v2402_v14  }
  0x80   :  { %102 = vperm.xlu1 %1891, %v2389_v10   ;;  %1354 = vmatpush2.bf16.msra.mxu0 %v1965_v25  ;;  %v2605_v25 = vrot.slane %v98_v9, %v761_v13 }
  0x81   :  { %1863 = vmatpush2.bf16.msra.mxu1 %v1968_v30  ;;  %1355 = vmatprep.subr.bf16.mxu0 %v1966_v27 }
  0x82   :  { %1848 = vmatprep.subr.bf16.mxu1 %v1969_v32 }
  0x83   :  { %840 = vperm.xlu0 %1904, %v2314_v53  }
  0x84   :  { %107 = vperm.xlu1 %1891, %v2300_v49   ;;  %1356 = vmatpush2.bf16.msra.mxu0 %v1968_v30  ;;  %v2610_v30 = vrot.slane %v98_v9, %v2581_v15 }
  0x85   :  { %1357 = vmatprep.subr.bf16.mxu0 %v1969_v32  ;;  %1864 = vmatpush2.bf16.msra.mxu1 %v1971_v34 }
  0x87   :  { %892 = vperm.xlu0 %1904, %v2336_v58  }
  0x88   :  { %167 = vperm.xlu1 %1891, %v2402_v14   ;;  %1358 = vmatpush2.bf16.msra.mxu0 %v1971_v34 }
  0x89   :  { %v2452_v28 = vpop.permute.xlu1 %440 }
  0x8a   :  { %v2468_v35 = vpop.permute.xlu0 %848 }
  0x8c   :  { %1892 = vset.pattern.permute.xlu1 %v2061_v2 }
  0x8d   :  { %v2462_v33 = vpop.permute.xlu1 %444  ;;  %872 = vperm.xlu1 %1892, %v2201_v26  }
  0x8e   :  { %v2474_v26 = vpop.permute.xlu0 %868 }
  0x91   :  { %1893 = vset.pattern.permute.xlu1 %v2059_v0 }
  0x92   :  { %v2471_v36 = vpop.permute.xlu1 %580  ;;  %424 = vperm.xlu1 %1893, %v2389_v10  }
  0x93   :  { %v2479_v38 = vpop.permute.xlu0 %122 }
  0x96   :  { %428 = vperm.xlu1 %1893, %v2300_v49  }
  0x97   :  { %v2477_v37 = vpop.permute.xlu1 %712 }
  0x98   :  { %v2484_v40 = vpop.permute.xlu0 %127 }
  0x9a   :  { %476 = vperm.xlu1 %1893, %v2402_v14  }
  0x9c   :  { %v2482_v39 = vpop.permute.xlu1 %132 }
  0x9d   :  { %v2491_v42 = vpop.permute.xlu0 %147 }
  0x9e   :  { %1894 = vset.pattern.permute.xlu1 %v2062_v12 }
  0x9f   :  { %560 = vperm.xlu1 %1894, %v2389_v10   ;;  %v99_v10 = vld [vmem:[%s3442_s3 + $0x8] sm:$0x1f] }
  0xa0   :  { %v2488_v41 = vpop.permute.xlu1 %137  ;;  %v2590_v19 = vrot.slane %v99_v10, %v2569_v8  ;;  %v2613_v32 = vrot.slane %v99_v10, %v761_v13  ;;  %v2618_v4 = vrot.slane %v99_v10, %v2581_v15 }
  0xa1   :  { %v2496_v44 = vpop.permute.xlu0 %152 }
  0xa3   :  { %608 = vperm.xlu1 %1894, %v2218_v29  }
  0xa5   :  { %v2493_v43 = vpop.permute.xlu1 %852  ;;  %v2504_v47 = vpop.permute.xlu0 %162 }
  0xa7   :  { %612 = vperm.xlu1 %1894, %v2402_v14   ;;  %v897_v14 = vsub.s32 4, %v181_v6 }
  0xa9   :  { %v2511_v50 = vpop.permute.xlu0 %117  ;;  %v2607_v27 = vrot.slane %v98_v9, %v897_v14  ;;  %v2615_v34 = vrot.slane %v99_v10, %v897_v14  ;;  %v2647_v14 = vmul.f32 %v2590_v19, %v2462_v33 }
  0xaa   :  { %v2498_v45 = vpop.permute.xlu1 %448 }
  0xab   :  { %1895 = vset.pattern.permute.xlu1 %v2063_v17  ;;  %v2636_v13 = vmul.f32 %v2607_v27, %v2468_v35 }
  0xac   :  { %700 = vperm.xlu1 %1895, %v2300_v49  }
  0xae   :  { %v2521_v54 = vpop.permute.xlu0 %452 }
  0xaf   :  { %v2502_v46 = vpop.permute.xlu1 %584 }
  0xb0   :  { %744 = vperm.xlu1 %1895, %v2218_v29  }
  0xb3   :  { %v2507_v48 = vpop.permute.xlu1 %588 }
  0xb4   :  { %1896 = vset.pattern.permute.xlu1 %v2060_v1  ;;  %v2527_v1 = vpop.permute.xlu0 %456 }
  0xb5   :  { %112 = vperm.xlu1 %1896, %v2314_v53  }
  0xb8   :  { %v2518_v52 = vpop.permute.xlu1 %724  ;;  %v2535_v59 = vpop.permute.xlu0 %472 }
  0xb9   :  { %172 = vperm.xlu1 %1896, %v2516_v51  }
  0xbc   :  { %v2541_v61 = vpop.permute.xlu0 %436 }
  0xbd   :  { %v2523_v55 = vpop.permute.xlu1 %142  ;;  %177 = vperm.xlu1 %1896, %v2336_v58  }
  0xc1   :  { %1898 = vset.pattern.permute.xlu1 %v2061_v2 }
  0xc2   :  { %v2529_v56 = vpop.permute.xlu1 %856  ;;  %836 = vperm.xlu1 %1898, %v2300_v49   ;;  %v2547_v49 = vpop.permute.xlu0 %576 }
  0xc6   :  { %v2532_v57 = vpop.permute.xlu1 %860  ;;  %880 = vperm.xlu1 %1898, %v2218_v29   ;;  %v2555_v29 = vpop.permute.xlu0 %596 }
  0xca   :  { %1899 = vset.pattern.permute.xlu1 %v2059_v0  ;;  %v2560_v5 = vpop.permute.xlu0 %600 }
  0xcb   :  { %v2538_v60 = vpop.permute.xlu1 %460  ;;  %432 = vperm.xlu1 %1899, %v2314_v53  }
  0xcf   :  { %480 = vperm.xlu1 %1899, %v2516_v51  }
  0xd0   :  { %v2544_v62 = vpop.permute.xlu1 %592 }
  0xd3   :  { %484 = vperm.xlu1 %1899, %v2336_v58  }
  0xd5   :  { %v2549_v63 = vpop.permute.xlu1 %728 }
  0xd7   :  { %1901 = vset.pattern.permute.xlu1 %v2062_v12  ;;  %v2567_v12 = vpop.permute.xlu0 %564 }
  0xd8   :  { %572 = vperm.xlu1 %1901, %v2226_v31   ;;  %3463 = vst [vmem:[#allocation6_spill] sm:$0xff] %v2567_v12  ;;  %v196_v12 = vmul.f32 %v2610_v30, %v2479_v38 }
  0xd9   :  { %v2553_v0 = vpop.permute.xlu1 %732 }
  0xdb   :  { %v2592_v20 = vpop.permute.xlu0 %568 }
  0xdc   :  { %616 = vperm.xlu1 %1901, %v2516_v51   ;;  %3469 = vst [vmem:[#allocation12_spill] sm:$0xff] %v2592_v20 }
  0xde   :  { %v2558_v3 = vpop.permute.xlu1 %157 }
  0xe0   :  { %1903 = vset.pattern.permute.xlu1 %v2063_v17  ;;  %v625_v17 = vsub.s32 2, %v181_v6 }
  0xe1   :  { %704 = vperm.xlu1 %1903, %v2314_v53  }
  0xe2   :  { %v2597_v22 = vrot.slane %v98_v9, %v625_v17  ;;  %v2628_v9 = vmul.f32 %v2587_v18, %v2452_v28 }
  0xe3   :  { %v2564_v7 = vpop.permute.xlu1 %864 }
  0xe5   :  { %752 = vperm.xlu1 %1903, %v2516_v51  }
  0xe7   :  { %v2579_v53 = vpop.f32.mrf.mxu0 }
  0xe8   :  { %v2577_v11 = vpop.permute.xlu1 %464  ;;  %3466 = vst [vmem:[#allocation9_spill] sm:$0xff] %v2579_v53  ;;  %v501_v53 = vmul.f32 %v2587_v18, %v2541_v61 }
  0xe9   :  { %3465 = vst [vmem:[#allocation8_spill] sm:$0xff] %v2577_v11  ;;  %756 = vperm.xlu1 %1903, %v2336_v58   ;;  %v2584_v16 = vpop.f32.mrf.mxu0  ;;  %v2603_v58 = vrot.slane %v99_v10, %v625_v17  ;;  %v2624_v17 = vrot.slane %v967_v21, %v2581_v15  ;;  %v2639_v10 = vrot.slane %v967_v21, %v2569_v8 }
  0xea   :  { %3468 = vst [vmem:[#allocation11_spill] sm:$0xff] %v2584_v16  ;;  %v2651_v15 = vmul.f32 %v2597_v22, %v2471_v36  ;;  %v2665_v8 = vmul.f32 %v2607_v27, %v2474_v26  ;;  %v2736_v11 = vmul.f32 %v2610_v30, %v2496_v44 }
  0xeb   :  { %v2601_v24 = vpop.f32.mrf.mxu0  ;;  %3473 = vst [vmem:[#allocation16_spill] sm:$0xff] %v2624_v17  ;;  %v2661_v21 = vmul.f32 %v2603_v58, %v2471_v36  ;;  %v2683_v36 = vmul.f32 %v2613_v32, %v2477_v37  ;;  %v2728_v17 = vmul.f32 %v2607_v27, %v2493_v43 }
  0xec   :  { %v2599_v23 = vpop.permute.xlu1 %468  ;;  %3471 = vst [vmem:[#allocation14_spill] sm:$0xff] %v2601_v24  ;;  %3475 = vst [vmem:[#allocation18_spill] sm:$0xff] %v2665_v8 }
  0xed   :  { %3470 = vst [vmem:[#allocation13_spill] sm:$0xff] %v2599_v23  ;;  %1905 = vset.pattern.permute.xlu1 %v2061_v2  ;;  %v2621_v6 = vpop.f32.mrf.mxu0  ;;  %v2632_v2 = vmul.f32 %v2590_v19, %v2452_v28  ;;  %v2655_v28 = vmul.f32 %v2615_v34, %v2468_v35  ;;  %v2675_v35 = vpop.permute.xlu0 %620  ;;  %v2718_v23 = vmul.f32 %v2610_v30, %v2491_v42  ;;  %3482 = vst [vmem:[#allocation25_spill] sm:$0xff] %v2728_v17 }
  0xee   :  { %844 = vperm.xlu1 %1905, %v2226_v31   ;;  %3472 = vst [vmem:[#allocation15_spill] sm:$0xff] %v2621_v6  ;;  %v2643_v31 = vmul.f32 %v2587_v18, %v2462_v33  ;;  %v2669_v33 = vmul.f32 %v2615_v34, %v2474_v26  ;;  %v194_v6 = vmul.f32 %v2610_v30, %v2511_v50  ;;  %3478 = vst [vmem:[#allocation21_spill] sm:$0xff] %v2675_v35 }
  0xef   :  { %v2657_v20 = vpop.f32.mrf.mxu0  ;;  %v197_v26 = vmul.f32 %v2618_v4, %v2479_v38  ;;  %v195_v35 = vmul.f32 %v2618_v4, %v2511_v50  ;;  %v198_v38 = vmul.f32 %v2610_v30, %v2484_v40  ;;  %v2710_v50 = vmul.f32 %v2610_v30, %v2488_v41  ;;  %3480 = vst [vmem:[#allocation23_spill] sm:$0xff] %v2718_v23 }
  0xf0   :  { %3474 = vst [vmem:[#allocation17_spill] sm:$0xff] %v2657_v20  ;;  %3476 = vst [vmem:[#allocation19_spill] sm:$0xff] %v2669_v33  ;;  %v2679_v20 = vmul.f32 %v2605_v25, %v2477_v37  ;;  %v2698_v37 = vmul.f32 %v2610_v30, %v2482_v39  ;;  %v2702_v33 = vmul.f32 %v2618_v4, %v2482_v39 }
  0xf1   :  { %v2673_v24 = vpop.permute.xlu1 %604  ;;  %v2690_v16 = vpop.f32.mrf.mxu0  ;;  %v2722_v39 = vmul.f32 %v2618_v4, %v2491_v42  ;;  %3483 = vst [vmem:[#allocation26_spill] sm:$0xff] %v2736_v11  ;;  %v2740_v42 = vmul.f32 %v2618_v4, %v2496_v44  ;;  %v2758_v44 = vmul.f32 %v2587_v18, %v2498_v45  ;;  %v2766_v11 = vmul.f32 %v2597_v22, %v2502_v46 }
  0xf2   :  { %3477 = vst [vmem:[#allocation20_spill] sm:$0xff] %v2673_v24  ;;  %888 = vperm.xlu1 %1905, %v2516_v51   ;;  %3479 = vst [vmem:[#allocation22_spill] sm:$0xff] %v2690_v16  ;;  %v199_v51 = vmul.f32 %v2618_v4, %v2484_v40  ;;  %v2714_v24 = vmul.f32 %v2618_v4, %v2488_v41  ;;  %v502_v40 = vmul.f32 %v2590_v19, %v2541_v61  ;;  %v2754_v17 = vpop.permute.xlu0 %716 }
  0xf3   :  { %v358_v16 = vpop.f32.mrf.mxu0  ;;  %3481 = vst [vmem:[#allocation24_spill] sm:$0xff] %v2722_v39  ;;  %v2732_v41 = vmul.f32 %v2615_v34, %v2493_v43  ;;  %3484 = vst [vmem:[#allocation27_spill] sm:$0xff] %v2740_v42  ;;  %v2820_v42 = vmul.f32 %v2587_v18, %v2535_v59 }
  0xf4   :  { %v359_v8 = vadd.f32 %v358_v16, %v194_v6  ;;  %v2746_v16 = vmul.f32 %v2610_v30, %v2504_v47  ;;  %v2750_v6 = vmul.f32 %v2618_v4, %v2504_v47  ;;  %v2770_v47 = vmul.f32 %v2603_v58, %v2502_v46 }
  0xf5   :  { %v360_v61 = vpop.f32.mrf.mxu0  ;;  %v2788_v46 = vmul.f32 %v2603_v58, %v2507_v48  ;;  %3494 = vst [vmem:[#allocation37_spill] sm:$0xff] %v2820_v42  ;;  %v2836_v42 = vmul.f32 %v2615_v34, %v2529_v56 }
  0xf6   :  { %v2742_v39 = vpop.permute.xlu1 %736  ;;  %3486 = vst [vmem:[#allocation29_spill] sm:$0xff] %v2746_v16  ;;  %3487 = vst [vmem:[#allocation30_spill] sm:$0xff] %v2750_v6  ;;  %v2752_v43 = vadd.f32 %v501_v53, %v359_v8  ;;  %v361_v23 = vadd.f32 %v360_v61, %v195_v35  ;;  %v2774_v53 = vmul.f32 %v2587_v18, %v2521_v54 }
  0xf7   :  { %3485 = vst [vmem:[#allocation28_spill] sm:$0xff] %v2742_v39  ;;  %v2762_v39 = vmul.f32 %v2590_v19, %v2498_v45  ;;  %v364_v8 = vpop.f32.mrf.mxu0  ;;  %v2778_v35 = vmul.f32 %v2590_v19, %v2521_v54  ;;  %3490 = vst [vmem:[#allocation33_spill] sm:$0xff] %v2788_v46  ;;  %v2792_v6 = vmul.f32 %v2587_v18, %v2527_v1  ;;  %v721_v46 = vpop.permute.xlu0 %720 }
  0xf8   :  { %3488 = vst [vmem:[#allocation31_spill] sm:$0xff] %v2752_v43  ;;  %v2780_v61 = vadd.f32 %v502_v40, %v361_v23  ;;  %v365_v45 = vadd.f32 %v364_v8, %v196_v12  ;;  %v2784_v43 = vmul.f32 %v2597_v22, %v2507_v48  ;;  %v2796_v16 = vmul.f32 %v2590_v19, %v2527_v1 }
  0xf9   :  { %v366_v54 = vpop.f32.mrf.mxu0  ;;  %v2800_v12 = vmul.f32 %v2605_v25, %v2518_v52  ;;  %v2804_v23 = vmul.f32 %v2613_v32, %v2518_v52  ;;  %v640_v48 = vmul.f32 %v2603_v58, %v2547_v49  ;;  %v2816_v1 = vmul.f32 %v2618_v4, %v2523_v55 }
  0xfa   :  { %3489 = vst [vmem:[#allocation32_spill] sm:$0xff] %v2780_v61  ;;  %3491 = vst [vmem:[#allocation34_spill] sm:$0xff] %v2796_v16  ;;  %v367_v40 = vadd.f32 %v366_v54, %v197_v26  ;;  %v2812_v61 = vmul.f32 %v2610_v30, %v2523_v55  ;;  %v2824_v52 = vmul.f32 %v2590_v19, %v2535_v59 }
  0xfb   :  { %3492 = vst [vmem:[#allocation35_spill] sm:$0xff] %v2804_v23  ;;  %v2808_v8 = vpop.permute.xlu1 %102  ;;  %v368_v23 = vpop.f32.mrf.mxu0  ;;  %v639_v26 = vmul.f32 %v2597_v22, %v2547_v49  ;;  %v535_v54 = vadd.f32 %v2628_v9, %v365_v45  ;;  %v2832_v55 = vmul.f32 %v2607_v27, %v2529_v56  ;;  %v2840_v59 = vmul.f32 %v2607_v27, %v2532_v57 }
  0xfc   :  { %3493 = vst [vmem:[#allocation36_spill] sm:$0xff] %v2808_v8  ;;  %3495 = vst [vmem:[#allocation38_spill] sm:$0xff] %v2824_v52  ;;  %v536_v8 = vadd.f32 %v2632_v2, %v367_v40  ;;  %v369_v16 = vadd.f32 %v368_v23, %v198_v38  ;;  %v2844_v49 = vmul.f32 %v2615_v34, %v2532_v57 }
  0xfd   :  { %v370_v9 = vpop.f32.mrf.mxu0  ;;  %v2848_v2 = vmul.f32 %v2597_v22, %v2555_v29  ;;  %v2852_v38 = vmul.f32 %v2603_v58, %v2555_v29  ;;  %v2858_v40 = vmul.f32 %v2587_v18, %v2538_v60  ;;  %v2862_v57 = vmul.f32 %v2590_v19, %v2538_v60 }
  0xfe   :  { %3496 = vst [vmem:[#allocation39_spill] sm:$0xff] %v2844_v49  ;;  %v672_v45 = vadd.f32 %v640_v48, %v536_v8  ;;  %v371_v56 = vadd.f32 %v370_v9, %v199_v51  ;;  %v2866_v52 = vmul.f32 %v2597_v22, %v2560_v5  ;;  %v537_v49 = vadd.f32 %v2643_v31, %v369_v16 }
  0xff   :  { %v2854_v23 = vpop.permute.xlu1 %107  ;;  %v374_v29 = vpop.f32.mrf.mxu0  ;;  %v2871_v51 = vmul.f32 %v2603_v58, %v2560_v5  ;;  %v671_v48 = vadd.f32 %v639_v26, %v535_v54  ;;  %v778_v9 = vmul.f32 %v2613_v32, %v2754_v17  ;;  %v647_v60 = vmul.f32 %v2597_v22, %v2544_v62 }
 0x100   :  { %3497 = vst [vmem:[#allocation40_spill] sm:$0xff] %v2854_v23  ;;  %3498 = vst [vmem:[#allocation41_spill] sm:$0xff] %v2866_v52  ;;  %v538_v8 = vadd.f32 %v2647_v14, %v371_v56  ;;  %v741_v23 = vpop.permute.xlu0 %740  ;;  %v2880_v52 = vmul.f32 %v2603_v58, %v2544_v62  ;;  %v808_v31 = vadd.f32 %v2683_v36, %v672_v45 }
 0x101   :  { %3499 = vst [vmem:[#allocation42_spill] sm:$0xff] %v2871_v51  ;;  %v375_v16 = vadd.f32 %v374_v29, %v2698_v37  ;;  %v376_v5 = vpop.f32.mrf.mxu0  ;;  %v2886_v26 = vmul.f32 %v2605_v25, %v2549_v63  ;;  %v2890_v14 = vmul.f32 %v2613_v32, %v2549_v63  ;;  %v2898_v62 = vmul.f32 %v2605_v25, %v2553_v0 }
 0x102   :  { %v674_v54 = vadd.f32 %v2661_v21, %v538_v8  ;;  %v377_v56 = vadd.f32 %v376_v5, %v2702_v33  ;;  %v2902_v36 = vmul.f32 %v2613_v32, %v2553_v0  ;;  %v673_v37 = vadd.f32 %v2651_v15, %v537_v49 }
 0x103   :  { %v2894_v51 = vpop.permute.xlu1 %167  ;;  %v777_v63 = vmul.f32 %v2605_v25, %v2754_v17  ;;  %v378_v45 = vpop.f32.mrf.mxu0  ;;  %v807_v21 = vadd.f32 %v2679_v20, %v671_v48  ;;  %v2912_v5 = vmul.f32 %v2610_v30, %v2558_v3  ;;  %v2916_v0 = vmul.f32 %v2618_v4, %v2558_v3 }
 0x104   :  { %v810_v29 = vadd.f32 %v778_v9, %v674_v54  ;;  %v540_v33 = vadd.f32 %v2762_v39, %v377_v56  ;;  %v379_v8 = vadd.f32 %v378_v45, %v2710_v50  ;;  %v539_v15 = vadd.f32 %v2758_v44, %v375_v16  ;;  %v697_v9 = vpop.permute.xlu0 %696 }
 0x105   :  { %v380_v49 = vpop.f32.mrf.mxu0  ;;  %v944_v17 = vadd.f32 %v2655_v28, %v808_v31  ;;  %v779_v48 = vmul.f32 %v2605_v25, %v721_v46  ;;  %v780_v39 = vmul.f32 %v2613_v32, %v721_v46  ;;  %v2926_v54 = vmul.f32 %v2607_v27, %v2564_v7 }
 0x106   :  { %v946_v20 = vadd.f32 %v2732_v41, %v810_v29  ;;  %v541_v50 = vadd.f32 %v2774_v53, %v379_v8  ;;  %v809_v3 = vadd.f32 %v777_v63, %v673_v37  ;;  %v676_v56 = vadd.f32 %v2770_v47, %v540_v33  ;;  %v3500_v29 = vld [vmem:[#allocation8_spill] sm:$0xff]  ;;  %v3501_v33 = vld [vmem:[#allocation25_spill] sm:$0xff] }
 0x107   :  { %v381_v44 = vadd.f32 %v380_v49, %v2714_v24  ;;  %v384_v28 = vpop.f32.mrf.mxu0  ;;  %v2934_v41 = vmul.f32 %v2615_v34, %v2564_v7  ;;  %v943_v46 = vadd.f32 %v2636_v13, %v807_v21  ;;  %v2939_v31 = vmul.f32 %v2605_v25, %v741_v23 }
 0x108   :  { %v2930_v16 = vpop.permute.xlu1 %872  ;;  %v677_v53 = vadd.f32 %v2784_v43, %v541_v50  ;;  %v675_v37 = vadd.f32 %v2766_v11, %v539_v15  ;;  %v385_v24 = vadd.f32 %v384_v28, %v2812_v61  ;;  %v988_v45 = vadd.f32 %v2639_v10, %v944_v17  ;;  %v3503_v50 = vld [vmem:[#allocation23_spill] sm:$0xff]  ;;  %v3504_v28 = vld [vmem:[#allocation16_spill] sm:$0xff] }
 0x109   :  { %v542_v47 = vadd.f32 %v2778_v35, %v381_v44  ;;  %v386_v63 = vpop.f32.mrf.mxu0  ;;  %v2947_v7 = vmul.f32 %v2587_v18, %v3500_v29  ;;  %v2951_v43 = vmul.f32 %v2613_v32, %v741_v23  ;;  %v990_v21 = vadd.f32 %v2639_v10, %v946_v20 }
 0x10a   :  { %v813_v13 = vadd.f32 %v2800_v12, %v677_v53  ;;  %v945_v11 = vadd.f32 %v3501_v33, %v809_v3  ;;  %v812_v8 = vadd.f32 %v780_v39, %v676_v56  ;;  %v543_v35 = vadd.f32 %v2792_v6, %v385_v24  ;;  %v3502_v12 = vld [vmem:[#allocation33_spill] sm:$0xff]  ;;  %v2969_v53 = vpop.permute.xlu0 %748  ;;  %v3506_v33 = vld [vmem:[#allocation34_spill] sm:$0xff] }
 0x10b   :  { %v387_v61 = vadd.f32 %v386_v63, %v2816_v1  ;;  %v388_v15 = vpop.f32.mrf.mxu0  ;;  %v2959_v49 = vmul.f32 %v2590_v19, %v3500_v29  ;;  %v678_v23 = vadd.f32 %v3502_v12, %v542_v47  ;;  %v811_v3 = vadd.f32 %v779_v48, %v675_v37  ;;  %v3505_v63 = vld [vmem:[#allocation24_spill] sm:$0xff] }
 0x10c   :  { %v2962_v17 = vadd.f32 %v2840_v59, %v813_v13  ;;  %v389_v44 = vadd.f32 %v388_v15, %v3503_v50  ;;  %v679_v39 = vadd.f32 %v647_v60, %v543_v35  ;;  %v1052_v6 = vmul.f32 0.2, %v988_v45  ;;  %v3507_v60 = vld [vmem:[#allocation35_spill] sm:$0xff] }
 0x10d   :  { %v2966_v20 = vpop.permute.xlu1 %424  ;;  %v390_v56 = vpop.f32.mrf.mxu0  ;;  %v987_v1 = vadd.f32 %v3504_v28, %v943_v46  ;;  %vm1022_vm2 = vcmp.gt.f32.partialorder %v990_v21, 0.0  ;;  %v1054_v59 = vmul.f32 0.2, %v990_v21  ;;  %v989_v47 = vadd.f32 %v3504_v28, %v945_v11 }
 0x10e   :  { %v545_v24 = vadd.f32 %v2858_v40, %v389_v44  ;;  %v391_v29 = vadd.f32 %v390_v56, %v3505_v63  ;;  %v948_v13 = vadd.f32 %v2836_v42, %v812_v8  ;;  %v544_v15 = vadd.f32 %v3506_v33, %v387_v61 }
 0x10f   :  { %v394_v48 = vpop.f32.mrf.mxu0  ;;  %vm1020_vm3 = vcmp.gt.f32.partialorder %v988_v45, 0.0  ;;  %v814_v37 = vadd.f32 %v3507_v60, %v678_v23  ;;  %v2979_v35 = vmul.f32 %v2605_v25, %v697_v9  ;;  %v2985_v50 = vmul.f32 %v2613_v32, %v697_v9  ;;  %v2992_v9 = vpop.permute.xlu0 %708 }
 0x110   :  { %v681_v46 = vadd.f32 %v2848_v2, %v545_v24  ;;  %v546_v40 = vadd.f32 %v2862_v57, %v391_v29  ;;  %v1086_v11 = vsel %vm1022_vm2, %v990_v21, %v1054_v59  ;;  %vm1019_vm4 = vcmp.gt.f32.partialorder %v987_v1, 0.0  ;;  %v3508_v21 = vld [vmem:[#allocation39_spill] sm:$0xff]  ;;  %v3509_v59 = vld [vmem:[#allocation18_spill] sm:$0xff] }
 0x111   :  { %v2982_v12 = vpop.permute.xlu1 %428  ;;  %v1051_v42 = vmul.f32 0.2, %v987_v1  ;;  %v396_v8 = vpop.f32.mrf.mxu0  ;;  %v947_v61 = vadd.f32 %v2832_v55, %v811_v3  ;;  %v1084_v44 = vsel %vm1020_vm3, %v988_v45, %v1052_v6  ;;  %v992_v56 = vadd.f32 %v2639_v10, %v948_v13  ;;  %v3511_v6 = vld [vmem:[#allocation20_spill] sm:$0xff] }
 0x112   :  { %v817_v23 = vadd.f32 %v2898_v62, %v681_v46  ;;  %v682_v2 = vadd.f32 %v2852_v38, %v546_v40  ;;  %v680_v57 = vadd.f32 %v2880_v52, %v544_v15  ;;  %v1112_v24 = vpack.c.bf16 %v1086_v11, %v1084_v44  ;;  %v3510_v38 = vld [vmem:[#allocation13_spill] sm:$0xff]  ;;  %v3512_v15 = vld [vmem:[#allocation27_spill] sm:$0xff] }
 0x113   :  { %vm1021_vm5 = vcmp.gt.f32.partialorder %v989_v47, 0.0  ;;  %v398_v63 = vpop.f32.mrf.mxu0  ;;  %v950_v29 = vadd.f32 %v3508_v21, %v814_v37  ;;  %v1053_v62 = vmul.f32 0.2, %v989_v47  ;;  %v517_v45 = vmul.f32 %v2587_v18, %v3510_v38  ;;  %v3513_v40 = vld [vmem:[#allocation19_spill] sm:$0xff] }
 0x114   :  { %v2996_v33 = vadd.f32 %v3509_v59, %v817_v23  ;;  %v818_v55 = vadd.f32 %v2902_v36, %v682_v2  ;;  %v518_v52 = vmul.f32 %v2590_v19, %v3510_v38  ;;  %v654_v13 = vmul.f32 %v2603_v58, %v3511_v6  ;;  %1379 = vmatprep.mubr.bf16.mxu1 %v1112_v24  ;;  %v3514_v38 = vld [vmem:[#allocation29_spill] sm:$0xff] }
 0x115   :  { %v2999_v3 = vpop.permute.xlu1 %476  ;;  %v397_v60 = vadd.f32 %v396_v8, %v3512_v15  ;;  %v400_v37 = vpop.f32.mrf.mxu0  ;;  %v991_v46 = vadd.f32 %v3504_v28, %v947_v61  ;;  %v1083_v11 = vsel %vm1019_vm4, %v987_v1, %v1051_v42  ;;  %v1085_v23 = vsel %vm1021_vm5, %v989_v47, %v1053_v62 }
 0x116   :  { %v3010_v36 = vadd.f32 %v3513_v40, %v818_v55  ;;  %v815_v2 = vadd.f32 %v2886_v26, %v679_v39  ;;  %v1111_v44 = vpack.c.bf16 %v1085_v23, %v1083_v11  ;;  %v399_v21 = vadd.f32 %v398_v63, %v2912_v5  ;;  %v3515_v55 = vld [vmem:[#allocation26_spill] sm:$0xff]  ;;  %v877_v39 = vpop.permute.xlu0 %876  ;;  %v3516_v5 = vld [vmem:[#allocation37_spill] sm:$0xff] }
 0x117   :  { %v401_v59 = vadd.f32 %v400_v37, %v2916_v0  ;;  %v404_v24 = vpop.f32.mrf.mxu0  ;;  %v816_v8 = vadd.f32 %v2890_v14, %v680_v57  ;;  %v994_v61 = vadd.f32 %v2639_v10, %v950_v29  ;;  %vm1024_vm6 = vcmp.gt.f32.partialorder %v992_v56, 0.0 }
 0x118   :  { %v405_v15 = vadd.f32 %v404_v24, %v3514_v38  ;;  %v395_v40 = vadd.f32 %v394_v48, %v3515_v55  ;;  %1380 = vmatmul.mubr.bf16.vlgmr.msra.gmra.mxu1 %v1111_v44  ;;  %v548_v1 = vadd.f32 %v2959_v49, %v397_v60  ;;  %v1056_v26 = vmul.f32 0.2, %v992_v56 }
 0x119   :  { %v550_v47 = vadd.f32 %v518_v52, %v401_v59  ;;  %vm1026_vm7 = vcmp.gt.f32.partialorder %v994_v61, 0.0  ;;  %v1058_v14 = vmul.f32 0.2, %v994_v61  ;;  %v993_v57 = vadd.f32 %v3504_v28, %v2962_v17  ;;  %v406_v60 = vpop.f32.mrf.mxu0 }
 0x11a   :  { %v3022_v42 = vpop.permute.xlu1 %560  ;;  %v3025_v0 = vadd.f32 %v3516_v5, %v405_v15  ;;  %v549_v63 = vadd.f32 %v517_v45, %v399_v21  ;;  %v1088_v62 = vsel %vm1024_vm6, %v992_v56, %v1056_v26  ;;  %vm1023_vm8 = vcmp.gt.f32.partialorder %v991_v46, 0.0  ;;  %v3517_v45 = vld [vmem:[#allocation28_spill] sm:$0xff]  ;;  %v3519_v15 = vld [vmem:[#allocation30_spill] sm:$0xff]  ;;  %v3044_v55 = vpop.permute.xlu0 %832 }
 0x11b   :  { %v686_v29 = vadd.f32 %v654_v13, %v550_v47  ;;  %v1090_v48 = vsel %vm1026_vm7, %v994_v61, %v1058_v14  ;;  %vm1025_vm9 = vcmp.gt.f32.partialorder %v993_v57, 0.0  ;;  %v1055_v49 = vmul.f32 0.2, %v991_v46  ;;  %v3518_v13 = vld [vmem:[#allocation36_spill] sm:$0xff]  ;;  %v3520_v47 = vld [vmem:[#allocation42_spill] sm:$0xff] }
 0x11c   :  { %v1057_v52 = vmul.f32 0.2, %v993_v57  ;;  %v653_v37 = vmul.f32 %v2597_v22, %v3511_v6  ;;  %v547_v11 = vadd.f32 %v2947_v7, %v395_v40  ;;  %v3034_v23 = vmul.f32 %v2613_v32, %v2969_v53 }
 0x11d   :  { %v1114_v44 = vpack.c.bf16 %v1090_v48, %v1088_v62  ;;  %v787_v56 = vmul.f32 %v2605_v25, %v3517_v45  ;;  %v188_v21 = vmul.f32 %v2610_v30, %v3518_v13  ;;  %v1087_v59 = vsel %vm1023_vm8, %v991_v46, %v1055_v49 }
 0x11e   :  { %v3036_v17 = vpop.permute.xlu1 %608  ;;  %v1089_v24 = vsel %vm1025_vm9, %v993_v57, %v1057_v52  ;;  %v952_v38 = vadd.f32 %v2934_v41, %v816_v8  ;;  %v685_v6 = vadd.f32 %v653_v37, %v549_v63  ;;  %v407_v61 = vadd.f32 %v406_v60, %v3519_v15  ;;  %v3521_v57 = vld [vmem:[#allocation41_spill] sm:$0xff]  ;;  %v3522_v63 = vld [vmem:[#allocation38_spill] sm:$0xff] }
 0x11f   :  { %1389 = vmatprep.mubr.bf16.mxu1 %v1114_v44  ;;  %v1113_v7 = vpack.c.bf16 %v1089_v24, %v1087_v59  ;;  %v951_v40 = vadd.f32 %v2926_v54, %v815_v2  ;;  %v684_v26 = vadd.f32 %v3520_v47, %v548_v1  ;;  %v822_v5 = vadd.f32 %v2951_v43, %v686_v29  ;;  %v3523_v2 = vld [vmem:[#allocation9_spill] sm:$0xff]  ;;  %v408_v59 = vpop.f32.mrf.mxu0 }
 0x120   :  { %v926_v14 = vmul.f32 %v2615_v34, %v877_v39  ;;  %v788_v46 = vmul.f32 %v2613_v32, %v3517_v45  ;;  %v683_v41 = vadd.f32 %v3521_v57, %v547_v11  ;;  %v925_v8 = vmul.f32 %v2607_v27, %v877_v39 }
 0x121   :  { %1390 = vmatmul.mubr.bf16.gmra.mxu1 %v1113_v7  ;;  %v3055_v62 = vadd.f32 %v3522_v63, %v407_v61  ;;  %v189_v54 = vmul.f32 %v2618_v4, %v3518_v13  ;;  %v345_v43 = vadd.f32 %v3523_v2, %v188_v21  ;;  %v923_v1 = vmul.f32 %v2607_v27, %v2930_v16 }
 0x122   :  { %v3057_v48 = vpop.permute.xlu1 %612  ;;  %v3066_v29 = vmul.f32 %v2607_v27, %v3044_v55  ;;  %v924_v39 = vmul.f32 %v2615_v34, %v2930_v16  ;;  %v821_v49 = vadd.f32 %v2939_v31, %v685_v6  ;;  %v996_v52 = vadd.f32 %v2639_v10, %v952_v38 }
 0x123   :  { %v998_v60 = vadd.f32 %v2639_v10, %v3010_v36  ;;  %v820_v37 = vadd.f32 %v788_v46, %v684_v26  ;;  %v958_v11 = vadd.f32 %v926_v14, %v822_v5  ;;  %v995_v44 = vadd.f32 %v3504_v28, %v951_v40  ;;  %v3524_v14 = vld [vmem:[#allocation11_spill] sm:$0xff]  ;;  %v3525_v46 = vld [vmem:[#allocation40_spill] sm:$0xff] }
 0x124   :  { %v997_v45 = vadd.f32 %v3504_v28, %v2996_v33  ;;  %v819_v13 = vadd.f32 %v787_v56, %v683_v41  ;;  %vm1028_vm10 = vcmp.gt.f32.partialorder %v996_v52, 0.0  ;;  %v1060_v21 = vmul.f32 0.2, %v996_v52 }
 0x125   :  { %vm1030_vm11 = vcmp.gt.f32.partialorder %v998_v60, 0.0  ;;  %v495_v16 = vmul.f32 %v2587_v18, %v2966_v20  ;;  %v496_v31 = vmul.f32 %v2590_v19, %v2966_v20  ;;  %v1062_v24 = vmul.f32 0.2, %v998_v60 }
 0x126   :  { %vm1027_vm12 = vcmp.gt.f32.partialorder %v995_v44, 0.0  ;;  %v957_v38 = vadd.f32 %v925_v8, %v821_v49  ;;  %vm1029_vm13 = vcmp.gt.f32.partialorder %v997_v45, 0.0  ;;  %v1059_v6 = vmul.f32 0.2, %v995_v44  ;;  %v410_v8 = vpop.f32.mrf.mxu0 }
 0x127   :  { %v3081_v36 = vpop.permute.xlu1 %700  ;;  %v1061_v7 = vmul.f32 0.2, %v997_v45  ;;  %v956_v33 = vadd.f32 %v924_v39, %v820_v37  ;;  %v1002_v56 = vadd.f32 %v2639_v10, %v958_v11  ;;  %v1092_v15 = vsel %vm1028_vm10, %v996_v52, %v1060_v21 }
 0x128   :  { %v1094_v61 = vsel %vm1030_vm11, %v998_v60, %v1062_v24  ;;  %v955_v40 = vadd.f32 %v923_v1, %v819_v13  ;;  %v1091_v26 = vsel %vm1027_vm12, %v995_v44, %v1059_v6  ;;  %v347_v20 = vadd.f32 %v3524_v14, %v189_v54 }
 0x129   :  { %v1116_v47 = vpack.c.bf16 %v1094_v61, %v1092_v15  ;;  %v1093_v5 = vsel %vm1029_vm13, %v997_v45, %v1061_v7  ;;  %v190_v57 = vmul.f32 %v2610_v30, %v3525_v46  ;;  %v631_v41 = vmul.f32 %v2597_v22, %v3022_v42 }
 0x12a   :  { %v1115_v63 = vpack.c.bf16 %v1093_v5, %v1091_v26  ;;  %v214_v39 = vmul.f32 %v2610_v30, %v2894_v51  ;;  %v215_v1 = vmul.f32 %v2618_v4, %v2894_v51  ;;  %v527_v49 = vadd.f32 %v495_v16, %v345_v43 }
 0x12b   :  { %v3089_v2 = vpop.permute.xlu1 %744  ;;  %v1001_v52 = vadd.f32 %v3504_v28, %v957_v38  ;;  %1399 = vmatprep.mubr.bf16.mxu1 %v1116_v47  ;;  %v632_v54 = vmul.f32 %v2603_v58, %v3022_v42  ;;  %v1000_v60 = vadd.f32 %v2639_v10, %v956_v33  ;;  %vm1034_vm14 = vcmp.gt.f32.partialorder %v1002_v56, 0.0 }
 0x12c   :  { %1400 = vmatmul.mubr.bf16.gmra.mxu1 %v1115_v63  ;;  %v1066_v37 = vmul.f32 0.2, %v1002_v56  ;;  %v528_v11 = vadd.f32 %v496_v31, %v347_v20  ;;  %v522_v44 = vmul.f32 %v2590_v19, %v2999_v3  ;;  %v411_v45 = vadd.f32 %v410_v8, %v215_v1  ;;  %v3526_v63 = vld [vmem:[#allocation6_spill] sm:$0xff] }
 0x12d   :  { %v999_v13 = vadd.f32 %v3504_v28, %v955_v40  ;;  %v663_v51 = vadd.f32 %v631_v41, %v527_v49  ;;  %vm1032_vm15 = vcmp.gt.f32.partialorder %v1000_v60, 0.0  ;;  %v1064_v43 = vmul.f32 0.2, %v1000_v60  ;;  %v3527_v1 = vld [vmem:[#allocation14_spill] sm:$0xff] }
 0x12e   :  { %v1098_v21 = vsel %vm1034_vm14, %v1002_v56, %v1066_v37  ;;  %v658_v16 = vmul.f32 %v2603_v58, %v3057_v48  ;;  %vm1033_vm1 = vcmp.gt.f32.partialorder %v1001_v52, 0.0  ;;  %v664_v38 = vadd.f32 %v632_v54, %v528_v11 }
 0x12f   :  { %vm1031_vm0 = vcmp.gt.f32.partialorder %v999_v13, 0.0  ;;  %v1063_v42 = vmul.f32 0.2, %v999_v13  ;;  %v409_v31 = vadd.f32 %v408_v59, %v214_v39  ;;  %v1096_v6 = vsel %vm1032_vm15, %v1000_v60, %v1064_v43 }
 0x130   :  { %v3104_v24 = vpop.permute.xlu1 %112  ;;  %v1065_v7 = vmul.f32 0.2, %v1001_v52  ;;  %v191_v33 = vmul.f32 %v2618_v4, %v3525_v46  ;;  %v521_v15 = vmul.f32 %v2587_v18, %v2999_v3  ;;  %v554_v61 = vadd.f32 %v522_v44, %v411_v45 }
 0x131   :  { %v1118_v56 = vpack.c.bf16 %v1098_v21, %v1096_v6  ;;  %v799_v40 = vadd.f32 %v2979_v35, %v663_v51  ;;  %v657_v47 = vmul.f32 %v2597_v22, %v3057_v48  ;;  %v1095_v26 = vsel %vm1031_vm0, %v999_v13, %v1063_v42  ;;  %v885_v48 = vpop.permute.xlu0 %884 }
 0x132   :  { %v1097_v5 = vsel %vm1033_vm1, %v1001_v52, %v1065_v7  ;;  %v497_v59 = vmul.f32 %v2587_v18, %v2982_v12  ;;  %v498_v14 = vmul.f32 %v2590_v19, %v2982_v12  ;;  %v690_v20 = vadd.f32 %v658_v16, %v554_v61  ;;  %v3528_v52 = vld [vmem:[#allocation15_spill] sm:$0xff] }
 0x133   :  { %1409 = vmatprep.mubr.bf16.mxu1 %v1118_v56  ;;  %v1117_v46 = vpack.c.bf16 %v1097_v5, %v1095_v26  ;;  %v553_v3 = vadd.f32 %v521_v15, %v409_v31  ;;  %v800_v8 = vadd.f32 %v2985_v50, %v664_v38  ;;  %v904_v35 = vmul.f32 %v2615_v34, %v3044_v55 }
 0x134   :  { %v3117_v41 = vpop.permute.xlu1 %172  ;;  %v633_v39 = vmul.f32 %v2597_v22, %v3526_v63  ;;  %v349_v49 = vadd.f32 %v3527_v1, %v190_v57  ;;  %v351_v54 = vadd.f32 %v3528_v52, %v191_v33  ;;  %v634_v12 = vmul.f32 %v2603_v58, %v3526_v63 }
 0x135   :  { %1410 = vmatmul.mubr.bf16.gmra.mxu1 %v1117_v46  ;;  %v793_v60 = vmul.f32 %v2605_v25, %v2969_v53  ;;  %v935_v50 = vadd.f32 %v3066_v29, %v799_v40  ;;  %v689_v37 = vadd.f32 %v657_v47, %v553_v3  ;;  %v826_v44 = vadd.f32 %v3034_v23, %v690_v20 }
 0x136   :  { %v529_v11 = vadd.f32 %v497_v59, %v349_v49  ;;  %v530_v55 = vadd.f32 %v498_v14, %v351_v54  ;;  %v930_v45 = vmul.f32 %v2615_v34, %v885_v48  ;;  %v936_v57 = vadd.f32 %v904_v35, %v800_v8 }
 0x137   :  { %v929_v51 = vmul.f32 %v2607_v27, %v885_v48  ;;  %v769_v43 = vmul.f32 %v2605_v25, %v3081_v36  ;;  %v770_v53 = vmul.f32 %v2613_v32, %v3081_v36  ;;  %v979_v29 = vadd.f32 %v3504_v28, %v935_v50 }
 0x138   :  { %v3133_v13 = vpop.permute.xlu1 %177  ;;  %v655_v21 = vmul.f32 %v2597_v22, %v3036_v17  ;;  %v656_v23 = vmul.f32 %v2603_v58, %v3036_v17  ;;  %v825_v16 = vadd.f32 %v793_v60, %v689_v37  ;;  %v962_v42 = vadd.f32 %v930_v45, %v826_v44 }
 0x139   :  { %v665_v38 = vadd.f32 %v633_v39, %v529_v11  ;;  %v666_v31 = vadd.f32 %v634_v12, %v530_v55  ;;  %v980_v6 = vadd.f32 %v2639_v10, %v936_v57  ;;  %v791_v7 = vmul.f32 %v2605_v25, %v3089_v2 }
 0x13a   :  { %v792_v36 = vmul.f32 %v2613_v32, %v3089_v2  ;;  %v1043_v17 = vmul.f32 0.2, %v979_v29  ;;  %v687_v47 = vadd.f32 %v655_v21, %v3025_v0  ;;  %v688_v26 = vadd.f32 %v656_v23, %v3055_v62 }
 0x13b   :  { %v801_v15 = vadd.f32 %v769_v43, %v665_v38  ;;  %v802_v61 = vadd.f32 %v770_v53, %v666_v31  ;;  %v961_v5 = vadd.f32 %v929_v51, %v825_v16  ;;  %vm1011_vm2 = vcmp.gt.f32.partialorder %v979_v29, 0.0 }
 0x13c   :  { %v1006_v59 = vadd.f32 %v2639_v10, %v962_v42  ;;  %v823_v46 = vadd.f32 %v791_v7, %v687_v47  ;;  %v824_v2 = vadd.f32 %v792_v36, %v688_v26  ;;  %vm1012_vm3 = vcmp.gt.f32.partialorder %v980_v6, 0.0  ;;  %v414_v7 = vpop.f32.mrf.mxu0 }
 0x13d   :  { %v837_v33 = vpop.permute.xlu1 %836  ;;  %v1044_v8 = vmul.f32 0.2, %v980_v6  ;;  %v1075_v62 = vsel %vm1011_vm2, %v979_v29, %v1043_v17  ;;  %v1005_v39 = vadd.f32 %v3504_v28, %v961_v5  ;;  %v193_v36 = vmul.f32 %v2618_v4, %v3104_v24  ;;  %v3529_v5 = vld [vmem:[#allocation31_spill] sm:$0xff] }
 0x13e   :  { %v905_v56 = vmul.f32 %v2607_v27, %v837_v33  ;;  %v906_v40 = vmul.f32 %v2615_v34, %v837_v33  ;;  %vm1038_vm6 = vcmp.gt.f32.partialorder %v1006_v59, 0.0  ;;  %v1070_v55 = vmul.f32 0.2, %v1006_v59 }
 0x13f   :  { %v1076_v12 = vsel %vm1012_vm3, %v980_v6, %v1044_v8  ;;  %vm1037_vm7 = vcmp.gt.f32.partialorder %v1005_v39, 0.0  ;;  %v1069_v57 = vmul.f32 0.2, %v1005_v39  ;;  %v773_v47 = vmul.f32 %v2605_v25, %v2992_v9 }
 0x140   :  { %v937_v14 = vadd.f32 %v905_v56, %v801_v15  ;;  %v938_v20 = vadd.f32 %v906_v40, %v802_v61  ;;  %v1102_v23 = vsel %vm1038_vm6, %v1006_v59, %v1070_v55  ;;  %v416_v15 = vpop.f32.mrf.mxu0  ;;  %v192_v40 = vmul.f32 %v2610_v30, %v3104_v24 }
 0x141   :  { %v881_v3 = vpop.permute.xlu1 %880  ;;  %v1101_v38 = vsel %vm1037_vm7, %v1005_v39, %v1069_v57  ;;  %v774_v26 = vmul.f32 %v2613_v32, %v2992_v9  ;;  %v218_v9 = vmul.f32 %v2610_v30, %v3133_v13  ;;  %v3533_v39 = vld [vmem:[#allocation12_spill] sm:$0xff] }
 0x142   :  { %v981_v35 = vadd.f32 %v3504_v28, %v937_v14  ;;  %v982_v48 = vadd.f32 %v2639_v10, %v938_v20  ;;  %v927_v63 = vmul.f32 %v2607_v27, %v881_v3  ;;  %v928_v0 = vmul.f32 %v2615_v34, %v881_v3  ;;  %v3530_v14 = vld [vmem:[#allocation32_spill] sm:$0xff] }
 0x144   :  { %vm1013_vm4 = vcmp.gt.f32.partialorder %v981_v35, 0.0  ;;  %v1045_v1 = vmul.f32 0.2, %v981_v35  ;;  %v959_v49 = vadd.f32 %v927_v63, %v823_v46  ;;  %v960_v52 = vadd.f32 %v928_v0, %v824_v2  ;;  %v3531_v46 = vld [vmem:[#allocation22_spill] sm:$0xff]  ;;  %v3532_v63 = vld [vmem:[#allocation17_spill] sm:$0xff] }
 0x145   :  { %vm1014_vm5 = vcmp.gt.f32.partialorder %v982_v48, 0.0  ;;  %v1046_v54 = vmul.f32 0.2, %v982_v48  ;;  %v357_v2 = vadd.f32 %v3531_v46, %v193_v36  ;;  %v355_v0 = vadd.f32 %v3532_v63, %v192_v40 }
 0x146   :  { %v1077_v60 = vsel %vm1013_vm4, %v981_v35, %v1045_v1  ;;  %v1003_v50 = vadd.f32 %v3504_v28, %v959_v49  ;;  %v1004_v37 = vadd.f32 %v2639_v10, %v960_v52  ;;  %v433_v11 = vpop.permute.xlu1 %432  ;;  %v418_v35 = vpop.f32.mrf.mxu0  ;;  %v636_v1 = vmul.f32 %v2603_v58, %v3533_v39 }
 0x147   :  { %v1107_v44 = vpack.c.bf16 %v1077_v60, %v1075_v62  ;;  %v1078_v45 = vsel %vm1014_vm5, %v982_v48, %v1046_v54  ;;  %v500_v17 = vmul.f32 %v2590_v19, %v433_v11  ;;  %v499_v3 = vmul.f32 %v2587_v18, %v433_v11  ;;  %v841_v11 = vpop.permute.xlu0 %840 }
 0x148   :  { %v1108_v51 = vpack.c.bf16 %v1078_v45, %v1076_v12  ;;  %vm1036_vm8 = vcmp.gt.f32.partialorder %v1004_v37, 0.0  ;;  %v1068_v43 = vmul.f32 0.2, %v1004_v37  ;;  %vm1035_vm9 = vcmp.gt.f32.partialorder %v1003_v50, 0.0  ;;  %v420_v12 = vpop.f32.mrf.mxu0 }
 0x149   :  { %v1067_v53 = vmul.f32 0.2, %v1003_v50  ;;  %v532_v62 = vadd.f32 %v500_v17, %v357_v2  ;;  %v219_v49 = vmul.f32 %v2618_v4, %v3133_v13  ;;  %v531_v52 = vadd.f32 %v499_v3, %v355_v0 }
 0x14a   :  { %1359 = vmatprep.mubr.bf16.mxu0 %v1108_v51  ;;  %v481_v29 = vpop.permute.xlu1 %480  ;;  %v1100_v21 = vsel %vm1036_vm8, %v1004_v37, %v1068_v43  ;;  %v635_v54 = vmul.f32 %v2597_v22, %v3533_v39  ;;  %v419_v57 = vadd.f32 %v418_v35, %v218_v9  ;;  %v908_v13 = vmul.f32 %v2615_v34, %v841_v11 }
 0x14b   :  { %1360 = vmatmul.mubr.bf16.vlgmr.msra.gmra.mxu0 %v1107_v44  ;;  %v1120_v16 = vpack.c.bf16 %v1102_v23, %v1100_v21  ;;  %v1099_v42 = vsel %vm1035_vm9, %v1003_v50, %v1067_v53  ;;  %v668_v55 = vadd.f32 %v636_v1, %v532_v62  ;;  %v421_v51 = vadd.f32 %v420_v12, %v219_v49  ;;  %v893_v40 = vpop.permute.xlu0 %892 }
 0x14c   :  { %v1119_v31 = vpack.c.bf16 %v1101_v38, %v1099_v42  ;;  %v667_v43 = vadd.f32 %v635_v54, %v531_v52  ;;  %v907_v42 = vmul.f32 %v2607_v27, %v841_v11  ;;  %v216_v36 = vmul.f32 %v2610_v30, %v3117_v41 }
 0x14d   :  { %1419 = vmatprep.mubr.bf16.mxu1 %v1120_v16  ;;  %v523_v17 = vmul.f32 %v2587_v18, %v481_v29  ;;  %v933_v63 = vmul.f32 %v2607_v27, %v893_v40 }
 0x14e   :  { %v485_v6 = vpop.permute.xlu1 %484  ;;  %1420 = vmatmul.mubr.bf16.gmra.mxu1 %v1119_v31  ;;  %v3534_v31 = vld [vmem:[#allocation21_spill] sm:$0xff]  ;;  %v415_v46 = vadd.f32 %v414_v7, %v216_v36 }
 0x14f   :  { %v525_v60 = vmul.f32 %v2587_v18, %v485_v6  ;;  %v526_v37 = vmul.f32 %v2590_v19, %v485_v6  ;;  %v661_v6 = vmul.f32 %v2597_v22, %v3534_v31 }
 0x151   :  { %v557_v21 = vadd.f32 %v525_v60, %v419_v57  ;;  %v558_v16 = vadd.f32 %v526_v37, %v421_v51 }
 0x153   :  { %v573_v33 = vpop.permute.xlu1 %572 }
 0x154   :  { %v637_v61 = vmul.f32 %v2597_v22, %v573_v33  ;;  %v638_v56 = vmul.f32 %v2603_v58, %v573_v33  ;;  %v217_v33 = vmul.f32 %v2618_v4, %v3117_v41  ;;  %v934_v41 = vmul.f32 %v2615_v34, %v893_v40 }
 0x156   :  { %v669_v59 = vadd.f32 %v637_v61, %v3529_v5  ;;  %v670_v20 = vadd.f32 %v638_v56, %v3530_v14  ;;  %v662_v61 = vmul.f32 %v2603_v58, %v3534_v31  ;;  %v693_v5 = vadd.f32 %v661_v6, %v557_v21 }
 0x157   :  { %v617_v8 = vpop.permute.xlu1 %616  ;;  %v417_v2 = vadd.f32 %v416_v15, %v217_v33 }
 0x158   :  { %v3178_v48 = vadd.f32 %v773_v47, %v669_v59  ;;  %v3180_v24 = vadd.f32 %v774_v26, %v670_v20  ;;  %v524_v47 = vmul.f32 %v2590_v19, %v481_v29  ;;  %v694_v14 = vadd.f32 %v662_v61, %v558_v16 }
 0x159   :  { %v659_v4 = vmul.f32 %v2597_v22, %v617_v8  ;;  %v660_v3 = vmul.f32 %v2603_v58, %v617_v8  ;;  %v555_v29 = vadd.f32 %v523_v17, %v415_v46 }
 0x15a   :  { %v556_v62 = vadd.f32 %v524_v47, %v417_v2 }
 0x15b   :  { %v691_v39 = vadd.f32 %v659_v4, %v555_v29 }
 0x15c   :  { %v705_v50 = vpop.permute.xlu1 %704  ;;  %v692_v8 = vadd.f32 %v660_v3, %v556_v62 }
 0x15d   :  { %v771_v44 = vmul.f32 %v2605_v25, %v705_v50  ;;  %v772_v45 = vmul.f32 %v2613_v32, %v705_v50 }
 0x15f   :  { %v804_v53 = vadd.f32 %v772_v45, %v668_v55  ;;  %v803_v38 = vadd.f32 %v771_v44, %v667_v43 }
 0x160   :  { %v753_v23 = vpop.permute.xlu1 %752 }
 0x161   :  { %v940_v56 = vadd.f32 %v908_v13, %v804_v53  ;;  %v939_v59 = vadd.f32 %v907_v42, %v803_v38  ;;  %v795_v0 = vmul.f32 %v2605_v25, %v753_v23  ;;  %v796_v7 = vmul.f32 %v2613_v32, %v753_v23 }
 0x163   :  { %v984_v18 = vadd.f32 %v2639_v10, %v940_v56  ;;  %v983_v9 = vadd.f32 %v3504_v28, %v939_v59  ;;  %v827_v54 = vadd.f32 %v795_v0, %v691_v39  ;;  %v828_v60 = vadd.f32 %v796_v7, %v692_v8 }
 0x164   :  { %v757_v26 = vpop.permute.xlu1 %756 }
 0x165   :  { %v797_v20 = vmul.f32 %v2605_v25, %v757_v26  ;;  %v798_v30 = vmul.f32 %v2613_v32, %v757_v26  ;;  %v1048_v52 = vmul.f32 0.2, %v984_v18  ;;  %vm1016_vm10 = vcmp.gt.f32.partialorder %v984_v18, 0.0 }
 0x166   :  { %vm1015_vm11 = vcmp.gt.f32.partialorder %v983_v9, 0.0  ;;  %v1047_v37 = vmul.f32 0.2, %v983_v9 }
 0x167   :  { %v829_v35 = vadd.f32 %v797_v20, %v693_v5  ;;  %v830_v19 = vadd.f32 %v798_v30, %v694_v14  ;;  %v1155_v14 = vld [vmem:[#allocation3] sm:$0x3]  ;;  %v3535_v30 = vld [vmem:[#allocation10_spill] sm:$0xff] }
 0x168   :  { %v1079_v53 = vsel %vm1015_vm11, %v983_v9, %v1047_v37  ;;  %v3231_v46 = vrot.slane %v1155_v14, %v3535_v30 }
 0x169   :  { %v966_v15 = vadd.f32 %v934_v41, %v830_v19  ;;  %v845_v22 = vpop.permute.xlu1 %844  ;;  %v965_v49 = vadd.f32 %v933_v63, %v829_v35  ;;  %v3536_v41 = vld [vmem:[#allocation7_spill] sm:$0xff]  ;;  %v1536_v63 = vld [vmem:[%s3446_s7] sm:$0x3] }
 0x16a   :  { %v909_v1 = vmul.f32 %v2607_v27, %v845_v22  ;;  %v910_v58 = vmul.f32 %v2615_v34, %v845_v22  ;;  %v3234_v3 = vrot.slane %v1155_v14, %v3536_v41  ;;  %v3245_v39 = vrot.slane %v1536_v63, %v3535_v30 }
 0x16b   :  { %v1010_v50 = vadd.f32 %v2639_v10, %v966_v15  ;;  %v1009_v57 = vadd.f32 %v3504_v28, %v965_v49 }
 0x16c   :  { %v941_v12 = vadd.f32 %v909_v1, %v3178_v48  ;;  %v942_v25 = vadd.f32 %v910_v58, %v3180_v24  ;;  %v1080_v48 = vsel %vm1016_vm10, %v984_v18, %v1048_v52  ;;  %v3248_v1 = vrot.slane %v1536_v63, %v3536_v41 }
 0x16d   :  { %v889_v32 = vpop.permute.xlu1 %888  ;;  %vm1042_vm14 = vcmp.gt.f32.partialorder %v1010_v50, 0.0  ;;  %v1074_v42 = vmul.f32 0.2, %v1010_v50  ;;  %vm1041_vm15 = vcmp.gt.f32.partialorder %v1009_v57, 0.0 }
 0x16e   :  { %v985_v11 = vadd.f32 %v3504_v28, %v941_v12  ;;  %v986_v55 = vadd.f32 %v2639_v10, %v942_v25  ;;  %v931_v44 = vmul.f32 %v2607_v27, %v889_v32  ;;  %v932_v45 = vmul.f32 %v2615_v34, %v889_v32 }
 0x16f   :  { %v1073_v34 = vmul.f32 0.2, %v1009_v57  ;;  %v1106_v61 = vsel %vm1042_vm14, %v1010_v50, %v1074_v42 }
 0x170   :  { %v963_v51 = vadd.f32 %v931_v44, %v827_v54  ;;  %v964_v24 = vadd.f32 %v932_v45, %v828_v60  ;;  %vm1018_vm12 = vcmp.gt.f32.partialorder %v986_v55, 0.0  ;;  %v1050_v13 = vmul.f32 0.2, %v986_v55 }
 0x171   :  { %vm1017_vm13 = vcmp.gt.f32.partialorder %v985_v11, 0.0  ;;  %v1049_v43 = vmul.f32 0.2, %v985_v11  ;;  %v1105_v40 = vsel %vm1041_vm15, %v1009_v57, %v1073_v34 }
 0x172   :  { %v1007_v21 = vadd.f32 %v3504_v28, %v963_v51  ;;  %v1008_v23 = vadd.f32 %v2639_v10, %v964_v24  ;;  %v1082_v16 = vsel %vm1018_vm12, %v986_v55, %v1050_v13 }
 0x173   :  { %v1110_v27 = vpack.c.bf16 %v1082_v16, %v1080_v48  ;;  %v1081_v38 = vsel %vm1017_vm13, %v985_v11, %v1049_v43 }
 0x174   :  { %v1109_v31 = vpack.c.bf16 %v1081_v38, %v1079_v53  ;;  %vm1040_vm0 = vcmp.gt.f32.partialorder %v1008_v23, 0.0  ;;  %v1072_v6 = vmul.f32 0.2, %v1008_v23  ;;  %vm1039_vm1 = vcmp.gt.f32.partialorder %v1007_v21, 0.0 }
 0x175   :  { %1369 = vmatprep.mubr.bf16.mxu0 %v1110_v27  ;;  %v1071_v36 = vmul.f32 0.2, %v1007_v21 }
 0x176   :  { %1370 = vmatmul.mubr.bf16.gmra.mxu0 %v1109_v31  ;;  %v1104_v33 = vsel %vm1040_vm0, %v1008_v23, %v1072_v6 }
 0x177   :  { %v1122_v56 = vpack.c.bf16 %v1106_v61, %v1104_v33  ;;  %v1103_v28 = vsel %vm1039_vm1, %v1007_v21, %v1071_v36 }
 0x178   :  { %v1121_v10 = vpack.c.bf16 %v1105_v40, %v1103_v28 }
 0x179   :  { %1429 = vmatprep.mubr.bf16.mxu1 %v1122_v56 }
 0x17a   :  { %1430 = vmatmul.mubr.bf16.gmra.mxu1 %v1121_v10 }
 0x1d8   :  { %v1381_v17 = vpop.f32.mrf.mxu1 }
 0x1d9   :  { %v1382_v43 = vadd.f32 %v1381_v17, %v3231_v46 }
 0x1da   :  { %v1383_v47 = vpop.f32.mrf.mxu1 }
 0x1db   :  { %v1384_v24 = vadd.f32 %v1383_v47, %v3234_v3  ;;  %v1480_v27 = vmul.f32 0.2, %v1382_v43  ;;  %vm1448_vm7 = vcmp.gt.f32.partialorder %v1382_v43, 0.0 }
 0x1dc   :  { %v1385_v26 = vpop.f32.mrf.mxu1 }
 0x1dd   :  { %v1481_v21 = vmul.f32 0.2, %v1384_v24  ;;  %v1386_v23 = vadd.f32 %v1385_v26, %v3231_v46  ;;  %vm1449_vm6 = vcmp.gt.f32.partialorder %v1384_v24, 0.0  ;;  %v1512_v56 = vsel %vm1448_vm7, %v1382_v43, %v1480_v27 }
 0x1de   :  { %v1387_v5 = vpop.f32.mrf.mxu1 }
 0x1df   :  { %v1388_v53 = vadd.f32 %v1387_v5, %v3234_v3  ;;  %v1482_v6 = vmul.f32 0.2, %v1386_v23  ;;  %v1513_v33 = vsel %vm1449_vm6, %v1384_v24, %v1481_v21  ;;  %vm1450_vm9 = vcmp.gt.f32.partialorder %v1386_v23, 0.0 }
 0x1e0   :  { %v1557_v47 = vmul.f32 %v3248_v1, %v1513_v33 }
 0x1e1   :  { %v1391_v59 = vpop.f32.mrf.mxu1  ;;  %v1483_v38 = vmul.f32 0.2, %v1388_v53  ;;  %vm1451_vm8 = vcmp.gt.f32.partialorder %v1388_v53, 0.0  ;;  %v1514_v26 = vsel %vm1450_vm9, %v1386_v23, %v1482_v6 }
 0x1e2   :  { %v1392_v16 = vadd.f32 %v1391_v59, %v3231_v46  ;;  %v1556_v59 = vmul.f32 %v3245_v39, %v1512_v56 }
 0x1e3   :  { %v1393_v20 = vpop.f32.mrf.mxu1  ;;  %v1515_v28 = vsel %vm1451_vm8, %v1388_v53, %v1483_v38 }
 0x1e4   :  { %v1394_v34 = vadd.f32 %v1393_v20, %v3234_v3  ;;  %v1484_v36 = vmul.f32 0.2, %v1392_v16  ;;  %vm1452_vm10 = vcmp.gt.f32.partialorder %v1392_v16, 0.0 }
 0x1e5   :  { %v1395_v2 = vpop.f32.mrf.mxu1 }
 0x1e6   :  { %v1396_v61 = vadd.f32 %v1395_v2, %v3231_v46  ;;  %v1485_v40 = vmul.f32 0.2, %v1394_v34  ;;  %vm1453_vm11 = vcmp.gt.f32.partialorder %v1394_v34, 0.0  ;;  %v1516_v14 = vsel %vm1452_vm10, %v1392_v16, %v1484_v36 }
 0x1e7   :  { %v3241_v0 = vpop.f32.mrf.mxu1 }
 0x1e8   :  { %vm1454_vm12 = vcmp.gt.f32.partialorder %v1396_v61, 0.0  ;;  %v1486_v20 = vmul.f32 0.2, %v1396_v61  ;;  %v1398_v30 = vadd.f32 %v3241_v0, %v3234_v3 }
 0x1ea   :  { %vm1455_vm15 = vcmp.gt.f32.partialorder %v1398_v30, 0.0 }
 0x1ec   :  { %v3251_v52 = vpop.f32.mrf.mxu1 }
 0x1ed   :  { %v1402_v0 = vadd.f32 %v3251_v52, %v3231_v46 }
 0x1ee   :  { %v1403_v37 = vpop.f32.mrf.mxu1 }
 0x1f0   :  { %v3257_v45 = vpop.f32.mrf.mxu1 }
 0x1f1   :  { %v1406_v53 = vadd.f32 %v3257_v45, %v3231_v46 }
 0x1f2   :  { %v3259_v57 = vpop.f32.mrf.mxu1 }
 0x1f3   :  { %v1408_v52 = vadd.f32 %v3259_v57, %v3234_v3 }
 0x1f5   :  { %v3261_v48 = vpop.f32.mrf.mxu1  ;;  %v1491_v38 = vmul.f32 0.2, %v1408_v52 }
 0x1f6   :  { %v1412_v57 = vadd.f32 %v3261_v48, %v3231_v46 }
 0x1f7   :  { %v3263_v51 = vpop.f32.mrf.mxu1 }
 0x1f8   :  { %vm1460_vm6 = vcmp.gt.f32.partialorder %v1412_v57, 0.0 }
 0x1f9   :  { %v3266_v13 = vpop.f32.mrf.mxu1 }
 0x1fb   :  { %v3272_v42 = vpop.f32.mrf.mxu1 }
 0x1fc   :  { %v1418_v48 = vadd.f32 %v3272_v42, %v3234_v3 }
 0x1fe   :  { %vm1463_vm8 = vcmp.gt.f32.partialorder %v1418_v48, 0.0 }
 0x20b   :  { %v1361_v4 = vpop.f32.mrf.mxu0 }
 0x20c   :  { %v1362_v18 = vadd.f32 %v1361_v4, %v3231_v46  ;;  %v1559_v4 = vmul.f32 %v3248_v1, %v1515_v28  ;;  %v1490_v28 = vmul.f32 0.2, %v1406_v53 }
 0x20d   :  { %v1363_v35 = vpop.f32.mrf.mxu0 }
 0x20e   :  { %vm1440_vm2 = vcmp.gt.f32.partialorder %v1362_v18, 0.0  ;;  %v1472_v19 = vmul.f32 0.2, %v1362_v18  ;;  %v1364_v29 = vadd.f32 %v1363_v35, %v3234_v3  ;;  %v3275_v31 = vpop.f32.mrf.mxu1 }
 0x20f   :  { %v1365_v62 = vpop.f32.mrf.mxu0 }
 0x210   :  { %v1504_v9 = vsel %vm1440_vm2, %v1362_v18, %v1472_v19  ;;  %vm1441_vm3 = vcmp.gt.f32.partialorder %v1364_v29, 0.0  ;;  %v1473_v7 = vmul.f32 0.2, %v1364_v29  ;;  %v1366_v15 = vadd.f32 %v1365_v62, %v3231_v46  ;;  %v3278_v10 = vpop.f32.mrf.mxu1 }
 0x211   :  { %v1367_v22 = vpop.f32.mrf.mxu0  ;;  %v1548_v54 = vmul.f32 %v3245_v39, %v1504_v9  ;;  %v1517_v19 = vsel %vm1453_vm11, %v1394_v34, %v1485_v40  ;;  %v1592_v62 = vadd.f32 %v1557_v47, %v1556_v59  ;;  %v1560_v9 = vmul.f32 %v3245_v39, %v1516_v14 }
 0x212   :  { %v1505_v58 = vsel %vm1441_vm3, %v1364_v29, %v1473_v7  ;;  %vm1442_vm4 = vcmp.gt.f32.partialorder %v1366_v15, 0.0  ;;  %v1474_v8 = vmul.f32 0.2, %v1366_v15  ;;  %v1368_v49 = vadd.f32 %v1367_v22, %v3234_v3  ;;  %v3286_v41 = vpop.f32.mrf.mxu1 }
 0x213   :  { %v1549_v12 = vmul.f32 %v3248_v1, %v1505_v58  ;;  %v1404_v29 = vadd.f32 %v1403_v37, %v3234_v3  ;;  %v1558_v7 = vmul.f32 %v3245_v39, %v1514_v26  ;;  %v1518_v58 = vsel %vm1454_vm12, %v1396_v61, %v1486_v20 }
 0x214   :  { %vm1443_vm5 = vcmp.gt.f32.partialorder %v1368_v49, 0.0  ;;  %v1475_v25 = vmul.f32 0.2, %v1368_v49  ;;  %v1506_v60 = vsel %vm1442_vm4, %v1366_v15, %v1474_v8  ;;  %vm1456_vm3 = vcmp.gt.f32.partialorder %v1402_v0, 0.0 }
 0x215   :  { %v1580_v50 = vadd.f32 %v1549_v12, %v1548_v54  ;;  %v1550_v11 = vmul.f32 %v3245_v39, %v1506_v60  ;;  %v1561_v54 = vmul.f32 %v3248_v1, %v1517_v19  ;;  %v3298_v12 = vadd.f32 %v1559_v4, %v1558_v7  ;;  %v1427_v60 = vpop.f32.mrf.mxu1 }
 0x216   :  { %v1507_v32 = vsel %vm1443_vm5, %v1368_v49, %v1475_v25  ;;  %v1487_v25 = vmul.f32 0.2, %v1398_v30  ;;  %vm1457_vm1 = vcmp.gt.f32.partialorder %v1404_v29, 0.0  ;;  %v1414_v34 = vadd.f32 %v3263_v51, %v3234_v3 }
 0x217   :  { %1581 = vadd.xlane.f32.xlu1 %v1580_v50  ;;  %v1551_v55 = vmul.f32 %v3248_v1, %v1507_v32  ;;  %v1489_v32 = vmul.f32 0.2, %v1404_v29  ;;  %vm1459_vm4 = vcmp.gt.f32.partialorder %v1408_v52, 0.0  ;;  %v1562_v56 = vmul.f32 %v3245_v39, %v1518_v58 }
 0x218   :  { %v1519_v16 = vsel %vm1455_vm15, %v1398_v30, %v1487_v25  ;;  %vm1458_vm5 = vcmp.gt.f32.partialorder %v1406_v53, 0.0  ;;  %v1492_v51 = vmul.f32 0.2, %v1412_v57  ;;  %v1493_v59 = vmul.f32 0.2, %v1414_v34 }
 0x219   :  { %v1583_v44 = vadd.f32 %v1551_v55, %v1550_v11  ;;  %v1488_v55 = vmul.f32 0.2, %v1402_v0  ;;  %v1521_v36 = vsel %vm1457_vm1, %v1404_v29, %v1489_v32  ;;  %v1424_v14 = vadd.f32 %v3278_v10, %v3234_v3 }
 0x21a   :  { %v1565_v26 = vmul.f32 %v3248_v1, %v1521_v36  ;;  %vm1461_vm7 = vcmp.gt.f32.partialorder %v1414_v34, 0.0  ;;  %v1416_v20 = vadd.f32 %v3266_v13, %v3231_v46  ;;  %v1598_v42 = vadd.f32 %v1561_v54, %v1560_v9 }
 0x21b   :  { %1584 = vadd.xlane.f32.xlu0 %v1583_v44  ;;  %v1520_v40 = vsel %vm1456_vm3, %v1402_v0, %v1488_v55  ;;  %v1522_v4 = vsel %vm1458_vm5, %v1406_v53, %v1490_v28  ;;  %v1524_v10 = vsel %vm1460_vm6, %v1412_v57, %v1492_v51  ;;  %v1497_v7 = vmul.f32 0.2, %v1424_v14 }
 0x21c   :  { %v1428_v13 = vadd.f32 %v1427_v60, %v3234_v3  ;;  %v1525_v9 = vsel %vm1461_vm7, %v1414_v34, %v1493_v59  ;;  %vm1462_vm9 = vcmp.gt.f32.partialorder %v1416_v20, 0.0  ;;  %v1494_v0 = vmul.f32 0.2, %v1416_v20 }
 0x21d   :  { %vm1465_vm10 = vcmp.gt.f32.partialorder %v1424_v14, 0.0  ;;  %v1568_v54 = vmul.f32 %v3245_v39, %v1524_v10  ;;  %v1569_v25 = vmul.f32 %v3248_v1, %v1525_v9 }
 0x21e   :  { %vm1467_vm12 = vcmp.gt.f32.partialorder %v1428_v13, 0.0 }
 0x236   :  { %v1371_v17 = vpop.f32.mrf.mxu0 }
 0x237   :  { %v1372_v5 = vadd.f32 %v1371_v17, %v3231_v46  ;;  %v1563_v17 = vmul.f32 %v3248_v1, %v1519_v16 }
 0x238   :  { %v1373_v2 = vpop.f32.mrf.mxu0 }
 0x239   :  { %vm1444_vm13 = vcmp.gt.f32.partialorder %v1372_v5, 0.0  ;;  %v1476_v18 = vmul.f32 0.2, %v1372_v5  ;;  %v1374_v35 = vadd.f32 %v1373_v2, %v3234_v3  ;;  %v1564_v2 = vmul.f32 %v3245_v39, %v1520_v40 }
 0x23a   :  { %v1375_v63 = vpop.f32.mrf.mxu0  ;;  %v1431_v44 = vpop.f32.mrf.mxu1  ;;  %v1601_v19 = vadd.f32 %v1563_v17, %v1562_v56 }
 0x23b   :  { %vm1445_vm14 = vcmp.gt.f32.partialorder %v1374_v35, 0.0  ;;  %v1477_v15 = vmul.f32 0.2, %v1374_v35  ;;  %v1376_v22 = vadd.f32 %v1375_v63, %v3231_v46  ;;  %v1508_v49 = vsel %vm1444_vm13, %v1372_v5, %v1476_v18 }
 0x23c   :  { %v1377_v8 = vpop.f32.mrf.mxu0  ;;  %v1552_v24 = vmul.f32 %v3245_v39, %v1508_v49  ;;  %v1433_v33 = vpop.f32.mrf.mxu1  ;;  %v1523_v5 = vsel %vm1459_vm4, %v1408_v52, %v1491_v38  ;;  %v1495_v18 = vmul.f32 0.2, %v1418_v48  ;;  %v1604_v29 = vadd.f32 %v1565_v26, %v1564_v2 }
 0x23d   :  { %vm1446_vm0 = vcmp.gt.f32.partialorder %v1376_v22, 0.0  ;;  %v1478_v50 = vmul.f32 0.2, %v1376_v22  ;;  %v1378_v37 = vadd.f32 %v1377_v8, %v3234_v3  ;;  %v1509_v11 = vsel %vm1445_vm14, %v1374_v35, %v1477_v15 }
 0x23e   :  { %v1553_v43 = vmul.f32 %v3248_v1, %v1509_v11  ;;  %v1435_v30 = vpop.f32.mrf.mxu1  ;;  %v1422_v35 = vadd.f32 %v3275_v31, %v3231_v46  ;;  %v1567_v63 = vmul.f32 %v3248_v1, %v1523_v5  ;;  %v1566_v31 = vmul.f32 %v3245_v39, %v1522_v4 }
 0x23f   :  { %v1510_v21 = vsel %vm1446_vm0, %v1376_v22, %v1478_v50  ;;  %vm1447_vm2 = vcmp.gt.f32.partialorder %v1378_v37, 0.0  ;;  %v1479_v23 = vmul.f32 0.2, %v1378_v37  ;;  %v1527_v22 = vsel %vm1463_vm8, %v1418_v48, %v1495_v18 }
 0x240   :  { %v1586_v27 = vadd.f32 %v1553_v43, %v1552_v24  ;;  %v1554_v45 = vmul.f32 %v3245_v39, %v1510_v21  ;;  %v1437_v15 = vpop.f32.mrf.mxu1  ;;  %v1496_v58 = vmul.f32 0.2, %v1422_v35  ;;  %v1426_v8 = vadd.f32 %v3286_v41, %v3231_v46 }
 0x241   :  { %v1511_v6 = vsel %vm1447_vm2, %v1378_v37, %v1479_v23  ;;  %v1432_v49 = vadd.f32 %v1431_v44, %v3231_v46  ;;  %vm1464_vm11 = vcmp.gt.f32.partialorder %v1422_v35, 0.0  ;;  %v1607_v60 = vadd.f32 %v1567_v63, %v1566_v31 }
 0x242   :  { %1587 = vadd.xlane.f32.xlu0 %v1586_v27  ;;  %v1555_v61 = vmul.f32 %v3248_v1, %v1511_v6  ;;  %v1499_v50 = vmul.f32 0.2, %v1428_v13  ;;  %v1438_v52 = vadd.f32 %v1437_v15, %v3234_v3  ;;  %v1526_v37 = vsel %vm1462_vm9, %v1416_v20, %v1494_v0 }
 0x243   :  { %v1571_v41 = vmul.f32 %v3248_v1, %v1527_v22  ;;  %v1498_v11 = vmul.f32 0.2, %v1426_v8  ;;  %v1500_v55 = vmul.f32 0.2, %v1432_v49  ;;  %v1436_v44 = vadd.f32 %v1435_v30, %v3231_v46 }
 0x244   :  { %v1589_v47 = vadd.f32 %v1555_v61, %v1554_v45  ;;  %v1528_v24 = vsel %vm1464_vm11, %v1422_v35, %v1496_v58  ;;  %vm1466_vm14 = vcmp.gt.f32.partialorder %v1426_v8, 0.0  ;;  %vm1468_vm15 = vcmp.gt.f32.partialorder %v1432_v49, 0.0 }
 0x245   :  { %v1610_v43 = vadd.f32 %v1569_v25, %v1568_v54  ;;  %v1531_v53 = vsel %vm1467_vm12, %v1428_v13, %v1499_v50  ;;  %v1503_v21 = vmul.f32 0.2, %v1438_v52  ;;  %v1570_v23 = vmul.f32 %v3245_v39, %v1526_v37 }
 0x246   :  { %1593 = vadd.xlane.f32.xlu0 %v1592_v62  ;;  %1590 = vadd.xlane.f32.xlu1 %v1589_v47  ;;  %v1434_v62 = vadd.f32 %v1433_v33, %v3234_v3  ;;  %vm1471_vm0 = vcmp.gt.f32.partialorder %v1438_v52, 0.0  ;;  %v1572_v57 = vmul.f32 %v3245_v39, %v1528_v24  ;;  %v1530_v27 = vsel %vm1466_vm14, %v1426_v8, %v1498_v11 }
 0x247   :  { %v1502_v38 = vmul.f32 0.2, %v1436_v44  ;;  %v1613_v46 = vadd.f32 %v1571_v41, %v1570_v23  ;;  %v1532_v34 = vsel %vm1468_vm15, %v1432_v49, %v1500_v55  ;;  %vm1470_vm1 = vcmp.gt.f32.partialorder %v1436_v44, 0.0 }
 0x248   :  { %v1501_v32 = vmul.f32 0.2, %v1434_v62  ;;  %vm1469_vm13 = vcmp.gt.f32.partialorder %v1434_v62, 0.0  ;;  %v1575_v33 = vmul.f32 %v3248_v1, %v1531_v53  ;;  %v1535_v45 = vsel %vm1471_vm0, %v1438_v52, %v1503_v21 }
 0x249   :  { %v1576_v61 = vmul.f32 %v3245_v39, %v1532_v34  ;;  %v1574_v56 = vmul.f32 %v3245_v39, %v1530_v27  ;;  %v1534_v28 = vsel %vm1470_vm1, %v1436_v44, %v1502_v38  ;;  %v1579_v17 = vmul.f32 %v3248_v1, %v1535_v45 }
 0x24a   :  { %1599 = vadd.xlane.f32.xlu0 %v1598_v42  ;;  %1596 = vadd.xlane.f32.xlu1 %v3298_v12  ;;  %v1529_v12 = vsel %vm1465_vm10, %v1424_v14, %v1497_v7  ;;  %v1533_v16 = vsel %vm1469_vm13, %v1434_v62, %v1501_v32  ;;  %v1578_v51 = vmul.f32 %v3245_v39, %v1534_v28  ;;  %v3357_v26 = vstv %s3447_s8 }
 0x24b   :  { %v1573_v3 = vmul.f32 %v3248_v1, %v1529_v12  ;;  %v1577_v36 = vmul.f32 %v3248_v1, %v1533_v16  ;;  %v1619_v40 = vadd.f32 %v1575_v33, %v1574_v56  ;;  %vm1742_vm2 = vcmask 7168  }
 0x24c   :  { %v1625_v47 = vadd.f32 %v1579_v17, %v1578_v51 }
 0x24d   :  { %v1616_v6 = vadd.f32 %v1573_v3, %v1572_v57  ;;  %v1622_v48 = vadd.f32 %v1577_v36, %v1576_v61 }
 0x24e   :  { %1605 = vadd.xlane.f32.xlu0 %v1604_v29  ;;  %1602 = vadd.xlane.f32.xlu1 %v1601_v19 }
 0x252   :  { %1611 = vadd.xlane.f32.xlu0 %v1610_v43  ;;  %1608 = vadd.xlane.f32.xlu1 %v1607_v60 }
 0x256   :  { %1617 = vadd.xlane.f32.xlu0 %v1616_v6  ;;  %1614 = vadd.xlane.f32.xlu1 %v1613_v46 }
 0x25a   :  { %1623 = vadd.xlane.f32.xlu0 %v1622_v48  ;;  %1620 = vadd.xlane.f32.xlu1 %v1619_v40 }
 0x25e   :  { %1626 = vadd.xlane.f32.xlu1 %v1625_v47 }
 0x2a0   :  { %v1582_v5 = vpop.xlane.xlu1 %1581 }
 0x2a1   :  { %v1630_v59 = vadd.f32 %v3357_v26, %v1582_v5 }
 0x2a3   :  { %v1817_v14 = vmul.f32 -1.442695, %v1630_v59 }
 0x2a4   :  { %v1585_v20 = vpop.xlane.xlu0 %1584 }
 0x2a5   :  { %1972 = vpow2.f32 %v1817_v14  ;;  %v1631_v30 = vadd.f32 %v3357_v26, %v1585_v20 }
 0x2a7   :  { %v1818_v1 = vmul.f32 -1.442695, %v1631_v30 }
 0x2a9   :  { %1974 = vpow2.f32 %v1818_v1 }
 0x2b2   :  { %v1973_v42 = vpop.eup %1972 }
 0x2b3   :  { %v1694_v2 = vadd.f32 1.0, %v1973_v42 }
 0x2b5   :  { %1976 = vrcp.f32 %v1694_v2 }
 0x2b6   :  { %v1975_v39 = vpop.eup %1974 }
 0x2b7   :  { %v1695_v4 = vadd.f32 1.0, %v1975_v39 }
 0x2b9   :  { %1978 = vrcp.f32 %v1695_v4 }
 0x2c2   :  { %v1977_v18 = vpop.eup %1976 }
 0x2c3   :  { %1743 = vst.msk [vmem:[%s3448_s9] sm:$0xff] %vm1742_vm2, %v1977_v18 }
 0x2c6   :  { %v1979_v35 = vpop.eup %1978 }
 0x2c7   :  { %1744 = vst.msk [vmem:[%s3448_s9 + $0x8] sm:$0xff] %vm1742_vm2, %v1979_v35 }
 0x2cb   :  { %v1588_v19 = vpop.xlane.xlu0 %1587 }
 0x2cc   :  { %v1632_v29 = vadd.f32 %v3357_v26, %v1588_v19 }
 0x2ce   :  { %v1819_v10 = vmul.f32 -1.442695, %v1632_v29 }
 0x2cf   :  { %v1594_v63 = vpop.xlane.xlu0 %1593  ;;  %v1591_v7 = vpop.xlane.xlu1 %1590 }
 0x2d0   :  { %1980 = vpow2.f32 %v1819_v10  ;;  %v1634_v13 = vadd.f32 %v3357_v26, %v1594_v63  ;;  %v1633_v62 = vadd.f32 %v3357_v26, %v1591_v7 }
 0x2d2   :  { %v1821_v9 = vmul.f32 -1.442695, %v1634_v13  ;;  %v1820_v0 = vmul.f32 -1.442695, %v1633_v62 }
 0x2d3   :  { %v1600_v15 = vpop.xlane.xlu0 %1599  ;;  %v1597_v31 = vpop.xlane.xlu1 %1596 }
 0x2d4   :  { %1982 = vpow2.f32 %v1821_v9  ;;  %v1636_v22 = vadd.f32 %v3357_v26, %v1600_v15  ;;  %v1635_v58 = vadd.f32 %v3357_v26, %v1597_v31 }
 0x2d5   :  { %1984 = vpow2.f32 %v1820_v0 }
 0x2d6   :  { %v1823_v8 = vmul.f32 -1.442695, %v1636_v22  ;;  %v1822_v49 = vmul.f32 -1.442695, %v1635_v58 }
 0x2d7   :  { %v1606_v54 = vpop.xlane.xlu0 %1605  ;;  %v1603_v25 = vpop.xlane.xlu1 %1602 }
 0x2d8   :  { %1986 = vpow2.f32 %v1823_v8  ;;  %v1638_v60 = vadd.f32 %v3357_v26, %v1606_v54  ;;  %v1637_v50 = vadd.f32 %v3357_v26, %v1603_v25 }
 0x2d9   :  { %1988 = vpow2.f32 %v1822_v49 }
 0x2da   :  { %v1825_v32 = vmul.f32 -1.442695, %v1638_v60  ;;  %v1824_v52 = vmul.f32 -1.442695, %v1637_v50 }
 0x2db   :  { %v1612_v12 = vpop.xlane.xlu0 %1611  ;;  %v1609_v37 = vpop.xlane.xlu1 %1608 }
 0x2dc   :  { %1990 = vpow2.f32 %v1825_v32  ;;  %v1640_v41 = vadd.f32 %v3357_v26, %v1612_v12  ;;  %v1639_v11 = vadd.f32 %v3357_v26, %v1609_v37 }
 0x2dd   :  { %v1981_v55 = vpop.eup %1980  ;;  %1992 = vpow2.f32 %v1824_v52 }
 0x2de   :  { %v1696_v44 = vadd.f32 1.0, %v1981_v55  ;;  %v1827_v24 = vmul.f32 -1.442695, %v1640_v41  ;;  %v1826_v43 = vmul.f32 -1.442695, %v1639_v11 }
 0x2df   :  { %v1618_v3 = vpop.xlane.xlu0 %1617  ;;  %v1615_v53 = vpop.xlane.xlu1 %1614 }
 0x2e0   :  { %1994 = vrcp.f32 %v1696_v44  ;;  %v1642_v21 = vadd.f32 %v3357_v26, %v1618_v3  ;;  %v1641_v23 = vadd.f32 %v3357_v26, %v1615_v53 }
 0x2e1   :  { %v1983_v16 = vpop.eup %1982  ;;  %1996 = vpow2.f32 %v1827_v24 }
 0x2e2   :  { %v1985_v57 = vpop.eup %1984  ;;  %v1698_v27 = vadd.f32 1.0, %v1983_v16  ;;  %1998 = vpow2.f32 %v1826_v43  ;;  %v1829_v38 = vmul.f32 -1.442695, %v1642_v21  ;;  %v1828_v34 = vmul.f32 -1.442695, %v1641_v23 }
 0x2e3   :  { %v1697_v46 = vadd.f32 1.0, %v1985_v57  ;;  %v1624_v6 = vpop.xlane.xlu0 %1623  ;;  %v1621_v36 = vpop.xlane.xlu1 %1620 }
 0x2e4   :  { %2000 = vrcp.f32 %v1698_v27  ;;  %v1644_v33 = vadd.f32 %v3357_v26, %v1624_v6  ;;  %v1643_v45 = vadd.f32 %v3357_v26, %v1621_v36 }
 0x2e5   :  { %v1987_v61 = vpop.eup %1986  ;;  %2002 = vrcp.f32 %v1697_v46 }
 0x2e6   :  { %v1989_v56 = vpop.eup %1988  ;;  %v1700_v28 = vadd.f32 1.0, %v1987_v61  ;;  %2004 = vpow2.f32 %v1829_v38  ;;  %v1831_v48 = vmul.f32 -1.442695, %v1644_v33  ;;  %v1830_v17 = vmul.f32 -1.442695, %v1643_v45 }
 0x2e7   :  { %v1699_v40 = vadd.f32 1.0, %v1989_v56  ;;  %2006 = vpow2.f32 %v1828_v34  ;;  %v1627_v51 = vpop.xlane.xlu1 %1626 }
 0x2e8   :  { %2008 = vrcp.f32 %v1700_v28  ;;  %v1645_v47 = vadd.f32 %v3357_v26, %v1627_v51 }
 0x2e9   :  { %v1991_v5 = vpop.eup %1990  ;;  %2010 = vrcp.f32 %v1699_v40 }
 0x2ea   :  { %v1993_v59 = vpop.eup %1992  ;;  %v1702_v14 = vadd.f32 1.0, %v1991_v5  ;;  %2012 = vpow2.f32 %v1831_v48  ;;  %v1832_v20 = vmul.f32 -1.442695, %v1645_v47 }
 0x2eb   :  { %v1701_v30 = vadd.f32 1.0, %v1993_v59  ;;  %2014 = vpow2.f32 %v1830_v17 }
 0x2ec   :  { %2016 = vrcp.f32 %v1702_v14 }
 0x2ed   :  { %v1995_v1 = vpop.eup %1994  ;;  %2018 = vrcp.f32 %v1701_v30 }
 0x2ee   :  { %v1997_v42 = vpop.eup %1996  ;;  %1745 = vst.msk [vmem:[%s3448_s9 + $0x10] sm:$0xff] %vm1742_vm2, %v1995_v1  ;;  %2020 = vpow2.f32 %v1832_v20 }
 0x2ef   :  { %v1999_v2 = vpop.eup %1998  ;;  %v1704_v26 = vadd.f32 1.0, %v1997_v42 }
 0x2f0   :  { %v1703_v39 = vadd.f32 1.0, %v1999_v2 }
 0x2f1   :  { %v2001_v4 = vpop.eup %2000  ;;  %2022 = vrcp.f32 %v1704_v26 }
 0x2f2   :  { %v2003_v18 = vpop.eup %2002  ;;  %1747 = vst.msk [vmem:[%s3448_s9 + $0x20] sm:$0xff] %vm1742_vm2, %v2001_v4  ;;  %2024 = vrcp.f32 %v1703_v39 }
 0x2f3   :  { %v2005_v35 = vpop.eup %2004  ;;  %1746 = vst.msk [vmem:[%s3448_s9 + $0x18] sm:$0xff] %vm1742_vm2, %v2003_v18 }
 0x2f4   :  { %v2007_v19 = vpop.eup %2006  ;;  %v1706_v29 = vadd.f32 1.0, %v2005_v35 }
 0x2f5   :  { %v2009_v10 = vpop.eup %2008  ;;  %v1705_v63 = vadd.f32 1.0, %v2007_v19 }
 0x2f6   :  { %v2011_v7 = vpop.eup %2010  ;;  %1749 = vst.msk [vmem:[%s3448_s9 + $0x30] sm:$0xff] %vm1742_vm2, %v2009_v10  ;;  %2026 = vrcp.f32 %v1706_v29 }
 0x2f7   :  { %v2013_v13 = vpop.eup %2012  ;;  %1748 = vst.msk [vmem:[%s3448_s9 + $0x28] sm:$0xff] %vm1742_vm2, %v2011_v7  ;;  %2028 = vrcp.f32 %v1705_v63 }
 0x2f8   :  { %v2015_v62 = vpop.eup %2014  ;;  %v1708_v9 = vadd.f32 1.0, %v2013_v13 }
 0x2f9   :  { %v2017_v0 = vpop.eup %2016  ;;  %v1707_v15 = vadd.f32 1.0, %v2015_v62 }
 0x2fa   :  { %v2019_v31 = vpop.eup %2018  ;;  %1751 = vst.msk [vmem:[%s3448_s9 + $0x40] sm:$0xff] %vm1742_vm2, %v2017_v0  ;;  %2030 = vrcp.f32 %v1708_v9 }
 0x2fb   :  { %v2021_v22 = vpop.eup %2020  ;;  %1750 = vst.msk [vmem:[%s3448_s9 + $0x38] sm:$0xff] %vm1742_vm2, %v2019_v31  ;;  %2032 = vrcp.f32 %v1707_v15 }
 0x2fc   :  { %v1709_v58 = vadd.f32 1.0, %v2021_v22 }
 0x2fe   :  { %v2023_v8 = vpop.eup %2022  ;;  %2034 = vrcp.f32 %v1709_v58 }
 0x2ff   :  { %v2025_v49 = vpop.eup %2024  ;;  %1753 = vst.msk [vmem:[%s3448_s9 + $0x50] sm:$0xff] %vm1742_vm2, %v2023_v8 }
 0x300   :  { %1752 = vst.msk [vmem:[%s3448_s9 + $0x48] sm:$0xff] %vm1742_vm2, %v2025_v49 }
 0x303   :  { %v2027_v54 = vpop.eup %2026 }
 0x304   :  { %v2029_v25 = vpop.eup %2028  ;;  %1755 = vst.msk [vmem:[%s3448_s9 + $0x60] sm:$0xff] %vm1742_vm2, %v2027_v54 }
 0x305   :  { %1754 = vst.msk [vmem:[%s3448_s9 + $0x58] sm:$0xff] %vm1742_vm2, %v2029_v25 }
 0x307   :  { %v2031_v60 = vpop.eup %2030 }
 0x308   :  { %v2033_v50 = vpop.eup %2032  ;;  %1757 = vst.msk [vmem:[%s3448_s9 + $0x70] sm:$0xff] %vm1742_vm2, %v2031_v60 }
 0x309   :  { %1756 = vst.msk [vmem:[%s3448_s9 + $0x68] sm:$0xff] %vm1742_vm2, %v2033_v50 }
 0x30b   :  { %v2035_v32 = vpop.eup %2034 }
 0x30c   :  { %1758 = vst.msk [vmem:[%s3448_s9 + $0x78] sm:$0xff] %vm1742_vm2, %v2035_v32 }
 0x30d   :  { %1763 = vsyncpa [#allocation4], 1 }

</bundles_post_ra>
